<compile_context>
chip_gen: v7x
topology: tpu7x:2x2x1
jax: 0.10.0
libtpu: 0.0.40
codegen_flags: <defaults>
</compile_context>

<pallas_src>
import math

import jax
import jax.numpy as jnp
from jax import lax
from jax.experimental import pallas as pl
from jax.experimental.pallas import tpu as pltpu


# ----------------------------------------------------------------------------
# Pallas kernel: time-fused recurrent path for one M-tile.
#   grid = (num_m_tiles, T); T is the trailing ("arbitrary") axis.
#   gx_ref    : [1, tm, 4*Hd] bf16   x-conv gate pre-activations for step t
#   hc_in_ref : [tm, 2*Hd]    f32    initial stacked state (h | c), read at t==0
#   b_ref     : [1, 4*Hd]     f32    combined biases (b_x + b_h), gate order ifog
#   wh_ref    : [Hd, 4*Hd]    bf16   packed 1x1x1 hidden->gate weights
#   hseq_ref  : [1, tm, Hd]   f32    per-step hidden state output
#   hc_out_ref: [tm, 2*Hd]    f32    final stacked state, written at t==T-1
#   hc_sc     : [tm, 2*Hd]    f32    VMEM-resident running state across T
# ----------------------------------------------------------------------------
def _convlstm_seq_kernel(gx_ref, hc_in_ref, b_ref, wh_ref,
                         hseq_ref, hc_out_ref, hc_sc):
    t = pl.program_id(1)
    hd = wh_ref.shape[0]

    # Load the initial state into the resident VMEM scratch once per M-tile.
    @pl.when(t == 0)
    def _():
        hc_sc[...] = hc_in_ref[...]

    h = hc_sc[:, :hd]
    c = hc_sc[:, hd:]

    # Single bf16 MXU matmul (f32 accumulation). bf16 gx stream is upcast here;
    # bias added in-kernel (VPU work hidden under the DMA bottleneck).
    gates = (gx_ref[0].astype(jnp.float32)
             + b_ref[...]
             + jnp.dot(h.astype(wh_ref.dtype), wh_ref[...],
                       preferred_element_type=jnp.float32))

    # Activate the full lane-dense [tm, 4*Hd] tensor once, then slice.
    act = jax.nn.sigmoid(gates)
    i = act[:, 0 * hd:1 * hd]
    f = act[:, 1 * hd:2 * hd]
    o = act[:, 2 * hd:3 * hd]
    g = act[:, 3 * hd:4 * hd]          # NB: reference applies sigmoid to g too

    c_new = f * c + i * jnp.tanh(g)
    h_new = o * jnp.tanh(c_new)

    # Keep the state resident in VMEM across T; direct half-stores (no concat).
    hc_sc[:, :hd] = h_new
    hc_sc[:, hd:] = c_new

    # Per-step hidden-state output stream.
    hseq_ref[0] = h_new.astype(hseq_ref.dtype)

    # Final stacked state: output block index is constant across the T axis,
    # so it is written back to HBM only once per M-tile.
    @pl.when(t == pl.num_programs(1) - 1)
    def _():
        hc_out_ref[:, :hd] = h_new
        hc_out_ref[:, hd:] = c_new


def _round_up(n, m):
    return ((n + m - 1) // m) * m


def _vmem_cap_bytes():
    # ~75% of physical VMEM (leave headroom for compiler-internal scratch);
    # conservative 48 MiB fallback — safe on v7x's 64 MiB per-core VMEM.
    try:
        return int(0.75 * pltpu.get_tpu_info().vmem_capacity_bytes)
    except Exception:
        return 48 * 1024 * 1024


# ----------------------------------------------------------------------------
# Fused recurrent loop over T timesteps on the flattened state.
#   gx_seq : [T, M, 4*Hd] bf16, hc0 : [M, 2*Hd] f32,
#   wh : [Hd, 4*Hd] bf16, b : [1, 4*Hd] f32
# Returns (h_seq [T, M, Hd] f32, hc_final [M, 2*Hd] f32).
# ----------------------------------------------------------------------------
def convlstm_recurrent(gx_seq, hc0, wh, b, *, tm=1024):
    T, M, G = gx_seq.shape
    Hd = G // 4
    assert hc0.shape == (M, 2 * Hd)
    assert tm % 8 == 0, "tm must be a multiple of 8 (sublane granularity)"
    # Don't over-allocate tiles larger than the problem; keep sublane-aligned.
    tm = min(tm, max(8, _round_up(M, 8)))
    num_m = pl.cdiv(M, tm)  # ragged final tile handled by Pallas (no jnp.pad)

    # VMEM budget: bf16 gx stream + f32 outputs (double-buffered) + resident
    # state/scratch/weights, 4x headroom, capped below physical VMEM.
    need = (2 * tm * 4 * Hd * 2          # gx stream (bf16, double-buffered)
            + tm * 2 * Hd * 4            # hc_in (resident across T)
            + 2 * tm * Hd * 4            # h_seq stream (double-buffered)
            + tm * 2 * Hd * 4            # hc_out (resident across T)
            + tm * 2 * Hd * 4            # hc scratch
            + Hd * 4 * Hd * 2 + 4 * Hd * 4)
    vmem_limit = int(min(_vmem_cap_bytes(), max(4 * 1024 * 1024, 4 * need)))

    h_seq, hc_final = pl.pallas_call(
        _convlstm_seq_kernel,
        out_shape=(jax.ShapeDtypeStruct((T, M, Hd), jnp.float32),
                   jax.ShapeDtypeStruct((M, 2 * Hd), jnp.float32)),
        grid=(num_m, T),
        in_specs=[
            pl.BlockSpec((1, tm, 4 * Hd), lambda i, t: (t, i, 0)),
            pl.BlockSpec((tm, 2 * Hd), lambda i, t: (i, 0)),
            pl.BlockSpec((1, 4 * Hd), lambda i, t: (0, 0)),
            pl.BlockSpec((Hd, 4 * Hd), lambda i, t: (0, 0)),
        ],
        out_specs=[
            pl.BlockSpec((1, tm, Hd), lambda i, t: (t, i, 0)),
            pl.BlockSpec((tm, 2 * Hd), lambda i, t: (i, 0)),
        ],
        scratch_shapes=[pltpu.VMEM((tm, 2 * Hd), jnp.float32)],
        compiler_params=pltpu.CompilerParams(
            dimension_semantics=("parallel", "arbitrary"),
            vmem_limit_bytes=vmem_limit),
    )(gx_seq, hc0, b, wh)
    return h_seq, hc_final


# ----------------------------------------------------------------------------
# One-time parameter packing (hoisted out of the per-timestep path).
# ----------------------------------------------------------------------------
def pack_params(params, *, compute_dtype=jnp.bfloat16):
    Hd = params["W_hi"].shape[0]
    # x-conv weights: OIDHW (Hd, Cin, kd, kh, kw) per gate -> one DHWIO
    # (kd, kh, kw, Cin, 4*Hd) tensor, gate order (i, f, o, g).
    wx = jnp.concatenate([params["W_x" + g] for g in "ifoc"], axis=0)
    wx = wx.transpose(2, 3, 4, 1, 0).astype(compute_dtype)
    # Hidden 1x1x1 conv weights -> [Hd_in, 4*Hd_out] matmul matrix.
    wh = jnp.concatenate(
        [params["W_h" + g].reshape(Hd, Hd).T for g in "ifoc"], axis=1
    ).astype(compute_dtype)
    # Both biases combined; added inside the kernel in f32.
    b = jnp.concatenate([params["b_x" + g] + params["b_h" + g] for g in "ifoc"])
    return {"wx": wx, "wh": wh, "b": b.astype(jnp.float32).reshape(1, 4 * Hd)}


# ----------------------------------------------------------------------------
# x-path: all four strided 3-D convs, all timesteps, as ONE channels-last
# XLA conv (no im2col). Output stored in bf16 (f32 accumulation in the conv).
# ----------------------------------------------------------------------------
def x_gate_preactivations(x_seq, packed, stride_in=(1, 2, 2)):
    T, B = x_seq.shape[:2]
    x_flat = x_seq.reshape((T * B,) + x_seq.shape[2:])
    x_cl = x_flat.transpose(0, 2, 3, 4, 1)            # NCDHW -> NDHWC (once)
    gx = lax.conv_general_dilated(
        x_cl.astype(packed["wx"].dtype), packed["wx"],
        window_strides=stride_in, padding="VALID",
        dimension_numbers=("NDHWC", "DHWIO", "NDHWC"),
        preferred_element_type=jnp.float32)
    TB, Do, Ho, Wo, G = gx.shape
    # bf16 storage halves the dominant HBM stream feeding the recurrent kernel.
    return gx.reshape(T, B * Do * Ho * Wo, G).astype(packed["wx"].dtype)


# ----------------------------------------------------------------------------
# Layout conversion — only at sequence boundaries, never per timestep.
# ----------------------------------------------------------------------------
def pack_state(h, c):
    B, Hd, Do, Ho, Wo = h.shape
    M = B * Do * Ho * Wo
    hf = h.transpose(0, 2, 3, 4, 1).reshape(M, Hd)
    cf = c.transpose(0, 2, 3, 4, 1).reshape(M, Hd)
    return jnp.concatenate([hf, cf], axis=-1)         # [M, 2*Hd] f32


def unpack_state(hc, ncdhw_shape):
    B, Hd, Do, Ho, Wo = ncdhw_shape

    def back(flat):
        return flat.reshape(B, Do, Ho, Wo, Hd).transpose(0, 4, 1, 2, 3)

    return back(hc[:, :Hd]), back(hc[:, Hd:])


# ----------------------------------------------------------------------------
# Sequence interface: x_seq [T,B,Cin,D,H,W], h0/c0 NCDHW.
# Params are packed exactly once; state stays in VMEM across all T steps.
# ----------------------------------------------------------------------------
def convlstm_sequence(x_seq, h0, c0, params, *, stride_in=(1, 2, 2), tm=1024,
                      compute_dtype=jnp.bfloat16):
    B, Hd = h0.shape[0], h0.shape[1]
    Do, Ho, Wo = h0.shape[2:]
    T = x_seq.shape[0]
    packed = pack_params(params, compute_dtype=compute_dtype)
    gx_seq = x_gate_preactivations(x_seq, packed, stride_in)   # [T, M, 4Hd] bf16
    hc0 = pack_state(h0, c0)                                   # [M, 2Hd]  f32
    h_seq_flat, hc_T = convlstm_recurrent(gx_seq, hc0, packed["wh"],
                                          packed["b"], tm=tm)
    h_seq = h_seq_flat.reshape(T, B, Do, Ho, Wo, Hd).transpose(0, 1, 5, 2, 3, 4)
    h_T, c_T = unpack_state(hc_T, (B, Hd, Do, Ho, Wo))
    return h_seq, (h_T, c_T)


# ----------------------------------------------------------------------------
# Drop-in NCDHW interface matching ConvLSTMCell.forward(x, h, c)  (T == 1).
# For a time loop, call convlstm_sequence instead (params packed once, state
# VMEM-resident across T).
# ----------------------------------------------------------------------------
def convlstm_cell_forward(x, h, c, params, *, stride_in=(1, 2, 2), tm=1024,
                          compute_dtype=jnp.bfloat16):
    _, (h_new, c_new) = convlstm_sequence(x[None], h, c, params,
                                          stride_in=stride_in, tm=tm,
                                          compute_dtype=compute_dtype)
    return h_new, c_new


# ----------------------------------------------------------------------------
# Deterministic parameter init (mimics weight_init: U(-1/sqrt(N), 1/sqrt(N)), N=2).
# TODO(synk): conv3_w_out / get_output() is not part of forward(); omitted here.
# ----------------------------------------------------------------------------
def init_params(key, input_num, hidden_num, ksize_in=(2, 5, 5)):
    bound = 1.0 / math.sqrt(2.0)
    keys = iter(jax.random.split(key, 16))
    params = {}
    for g in "ifoc":
        params["W_x" + g] = jax.random.uniform(
            next(keys), (hidden_num, input_num) + ksize_in, jnp.float32, -bound, bound)
        params["b_x" + g] = jax.random.uniform(
            next(keys), (hidden_num,), jnp.float32, -bound, bound)
        params["W_h" + g] = jax.random.uniform(
            next(keys), (hidden_num, hidden_num, 1, 1, 1), jnp.float32, -bound, bound)
        params["b_h" + g] = jax.random.uniform(
            next(keys), (hidden_num,), jnp.float32, -bound, bound)
    return params


# ----------------------------------------------------------------------------
# Pure-JAX f32 reference (lax.conv_general_dilated) for correctness checking.
# ----------------------------------------------------------------------------
def _conv3d_ref(x, w, b, stride):
    out = lax.conv_general_dilated(
        x, w, window_strides=stride, padding="VALID",
        dimension_numbers=("NCDHW", "OIDHW", "NCDHW"))
    return out + b.reshape(1, -1, 1, 1, 1)


def ref_forward(x, h, c, params):
    sg = jax.nn.sigmoid

    def gate(g):
        return sg(_conv3d_ref(x, params["W_x" + g], params["b_x" + g], (1, 2, 2))
                  + _conv3d_ref(h, params["W_h" + g], params["b_h" + g], (1, 1, 1)))

    i, f, o, g = gate("i"), gate("f"), gate("o"), gate("c")
    c_new = f * c + i * jnp.tanh(g)
    h_new = o * jnp.tanh(c_new)
    return h_new, c_new


if __name__ == "__main__":
    key = jax.random.PRNGKey(0)
    kp, kx, kh, kc = jax.random.split(key, 4)

    # Small shapes consistent with the module: x NCDHW, kernel (2,5,5), stride (1,2,2).
    B, Cin, D, Hx, Wx = 2, 1, 4, 21, 21
    Hd, T = 8, 3
    Do, Ho, Wo = D - 2 + 1, (Hx - 5) // 2 + 1, (Wx - 5) // 2 + 1   # 3, 9, 9

    params = init_params(kp, Cin, Hd)
    x_seq = jax.random.normal(kx, (T, B, Cin, D, Hx, Wx), jnp.float32)
    h0 = jax.random.normal(kh, (B, Hd, Do, Ho, Wo), jnp.float32)
    c0 = jax.random.normal(kc, (B, Hd, Do, Ho, Wo), jnp.float32)

    # Toy M = B*Do*Ho*Wo = 486: tm=128 gives a 4-step parallel grid and
    # exercises the ragged (no-pad) final tile. At real sizes use the default
    # tm=1024 and sweep 1024/2048 (keep M/tm >= 4 on v7x for both TCs).
    tm = 128

    # Single-step drop-in (matches ConvLSTMCell.forward(x, h, c)).
    h1, c1 = convlstm_cell_forward(x_seq[0], h0, c0, params, tm=tm)
    h1 = jax.block_until_ready(h1)
    c1 = jax.block_until_ready(c1)
    h1_ref, c1_ref = ref_forward(x_seq[0], h0, c0, params)
    assert h1.shape == (B, Hd, Do, Ho, Wo) and c1.shape == (B, Hd, Do, Ho, Wo)
    # bf16 conv/matmul inputs (f32 accumulation) -> tolerance sized for bf16.
    assert jnp.allclose(h1, h1_ref, atol=3e-2, rtol=3e-2), "single-step h mismatch"
    assert jnp.allclose(c1, c1_ref, atol=3e-2, rtol=3e-2), "single-step c mismatch"

    # Time-fused sequence: state stays resident in VMEM across all T steps.
    h_seq, (h_T, c_T) = convlstm_sequence(x_seq, h0, c0, params, tm=tm)
    h_seq = jax.block_until_ready(h_seq)

    h_r, c_r = h0, c0
    for t in range(T):
        h_r, c_r = ref_forward(x_seq[t], h_r, c_r, params)
        assert jnp.allclose(h_seq[t], h_r, atol=5e-2, rtol=5e-2), f"h_seq[{t}] mismatch"
    assert jnp.allclose(h_T, h_r, atol=5e-2, rtol=5e-2), "final h mismatch"
    assert jnp.allclose(c_T, c_r, atol=5e-2, rtol=5e-2), "final c mismatch"

    print("KERNEL_OK")
</pallas_src>

<mosaic_0001>
module attributes {stable_mosaic.version = 11 : i64} {
  func.func @_convlstm_seq_kernel(%arg0: i32, %arg1: i32, %arg2: memref<1x128x32xbf16, #tpu.memory_space<vmem>>, %arg3: memref<128x16xf32, #tpu.memory_space<vmem>>, %arg4: memref<1x32xf32, #tpu.memory_space<vmem>>, %arg5: memref<8x32xbf16, #tpu.memory_space<vmem>>, %arg6: memref<1x128x8xf32, #tpu.memory_space<vmem>>, %arg7: memref<128x16xf32, #tpu.memory_space<vmem>>, %arg8: memref<128x16xf32, #tpu.memory_space<vmem>>) attributes {dimension_semantics = [#tpu.dimension_semantics<parallel>, #tpu.dimension_semantics<arbitrary>], iteration_bounds = array<i64: 4, 1>, scalar_prefetch = 0 : i64, scratch_operands = 1 : i64, tpu.core_type = #tpu.core_type<tc>, window_params = [{transform_indices = @transform_0, window_bounds = array<i64: 1, 128, 32>}, {transform_indices = @transform_1, window_bounds = array<i64: 128, 16>}, {pipeline_mode = #tpu.pipeline_mode<synchronous>, transform_indices = @transform_2, window_bounds = array<i64: 1, 32>}, {pipeline_mode = #tpu.pipeline_mode<synchronous>, transform_indices = @transform_3, window_bounds = array<i64: 8, 32>}, {transform_indices = @transform_4, window_bounds = array<i64: 1, 128, 8>}, {transform_indices = @transform_5, window_bounds = array<i64: 128, 16>}]} {
    %c0_i32 = arith.constant 0 : i32
    %0 = arith.cmpi eq, %arg1, %c0_i32 : i32
    %1 = arith.extui %0 : i1 to i32
    %c0_i32_0 = arith.constant 0 : i32
    %2 = arith.cmpi ne, %1, %c0_i32_0 : i32
    scf.if %2 {
      %c0_20 = arith.constant 0 : index
      %c0_21 = arith.constant 0 : index
      %38 = vector.load %arg3[%c0_20, %c0_21] : memref<128x16xf32, #tpu.memory_space<vmem>>, vector<128x16xf32>
      %c0_22 = arith.constant 0 : index
      %c0_23 = arith.constant 0 : index
      %39 = vector.load %arg8[%c0_22, %c0_23] : memref<128x16xf32, #tpu.memory_space<vmem>>, vector<128x16xf32>
      tpu.vector_store %arg8[%c0_22, %c0_23], %38 {strides = array<i32>} : memref<128x16xf32, #tpu.memory_space<vmem>>, vector<128x16xf32>,
    } else {
    }
    %c0 = arith.constant 0 : index
    %c0_1 = arith.constant 0 : index
    %3 = vector.load %arg8[%c0, %c0_1] : memref<128x16xf32, #tpu.memory_space<vmem>>, vector<128x8xf32>
    %c0_2 = arith.constant 0 : index
    %c8 = arith.constant 8 : index
    %4 = vector.load %arg8[%c0_2, %c8] : memref<128x16xf32, #tpu.memory_space<vmem>>, vector<128x8xf32>
    %c0_3 = arith.constant 0 : index
    %c0_4 = arith.constant 0 : index
    %c0_5 = arith.constant 0 : index
    %5 = vector.load %arg2[%c0_3, %c0_4, %c0_5] : memref<1x128x32xbf16, #tpu.memory_space<vmem>>, vector<1x128x32xbf16>
    %6 = vector.shape_cast %5 : vector<1x128x32xbf16> to vector<128x32xbf16>
    %7 = arith.extf %6 : vector<128x32xbf16> to vector<128x32xf32>
    %c0_6 = arith.constant 0 : index
    %c0_7 = arith.constant 0 : index
    %8 = vector.load %arg4[%c0_6, %c0_7] : memref<1x32xf32, #tpu.memory_space<vmem>>, vector<1x32xf32>
    %9 = vector.broadcast %8 : vector<1x32xf32> to vector<128x32xf32>
    %10 = arith.addf %7, %9 : vector<128x32xf32>
    %11 = arith.truncf %3 : vector<128x8xf32> to vector<128x8xbf16>
    %c0_8 = arith.constant 0 : index
    %c0_9 = arith.constant 0 : index
    %12 = vector.load %arg5[%c0_8, %c0_9] : memref<8x32xbf16, #tpu.memory_space<vmem>>, vector<8x32xbf16>
    %cst = arith.constant dense<0.000000e+00> : vector<128x32xf32>
    %13 = tpu.matmul %11, %12, %cst {dimension_numbers = #tpu.dot_dimension_numbers<[1], [0], [0], [1], [0, 0, 1, 1], [], []>} : vector<128x8xbf16>, vector<8x32xbf16>, vector<128x32xf32> -> vector<128x32xf32>
    %14 = arith.addf %10, %13 : vector<128x32xf32>
    %15 = arith.negf %14 : vector<128x32xf32>
    %16 = math.exp %15 : vector<128x32xf32>
    %cst_10 = arith.constant 1.000000e+00 : f32
    %17 = vector.broadcast %cst_10 : f32 to vector<128x32xf32>
    %18 = arith.addf %17, %16 : vector<128x32xf32>
    %19 = arith.divf %17, %18 : vector<128x32xf32>
    %20 = vector.extract_strided_slice %19 {offsets = [0, 0], sizes = [128, 8], strides = [1, 1]} : vector<128x32xf32> to vector<128x8xf32>
    %21 = vector.extract_strided_slice %19 {offsets = [0, 8], sizes = [128, 8], strides = [1, 1]} : vector<128x32xf32> to vector<128x8xf32>
    %22 = vector.extract_strided_slice %19 {offsets = [0, 16], sizes = [128, 8], strides = [1, 1]} : vector<128x32xf32> to vector<128x8xf32>
    %23 = vector.extract_strided_slice %19 {offsets = [0, 24], sizes = [128, 8], strides = [1, 1]} : vector<128x32xf32> to vector<128x8xf32>
    %24 = arith.mulf %21, %4 : vector<128x8xf32>
    %25 = math.tanh %23 : vector<128x8xf32>
    %26 = arith.mulf %20, %25 : vector<128x8xf32>
    %27 = arith.addf %24, %26 : vector<128x8xf32>
    %28 = math.tanh %27 : vector<128x8xf32>
    %29 = arith.mulf %22, %28 : vector<128x8xf32>
    %c0_11 = arith.constant 0 : index
    %c0_12 = arith.constant 0 : index
    %30 = vector.load %arg8[%c0_11, %c0_12] : memref<128x16xf32, #tpu.memory_space<vmem>>, vector<128x8xf32>
    tpu.vector_store %arg8[%c0_11, %c0_12], %29 {strides = array<i32>} : memref<128x16xf32, #tpu.memory_space<vmem>>, vector<128x8xf32>,
    %c0_13 = arith.constant 0 : index
    %c8_14 = arith.constant 8 : index
    %31 = vector.load %arg8[%c0_13, %c8_14] : memref<128x16xf32, #tpu.memory_space<vmem>>, vector<128x8xf32>
    tpu.vector_store %arg8[%c0_13, %c8_14], %27 {strides = array<i32>} : memref<128x16xf32, #tpu.memory_space<vmem>>, vector<128x8xf32>,
    %c0_15 = arith.constant 0 : index
    %c0_16 = arith.constant 0 : index
    %c0_17 = arith.constant 0 : index
    %32 = vector.load %arg6[%c0_15, %c0_16, %c0_17] : memref<1x128x8xf32, #tpu.memory_space<vmem>>, vector<1x128x8xf32>
    %33 = vector.shape_cast %32 : vector<1x128x8xf32> to vector<128x8xf32>
    %34 = vector.shape_cast %29 : vector<128x8xf32> to vector<1x128x8xf32>
    tpu.vector_store %arg6[%c0_15, %c0_16, %c0_17], %34 {strides = array<i32>} : memref<1x128x8xf32, #tpu.memory_space<vmem>>, vector<1x128x8xf32>,
    %c0_i32_18 = arith.constant 0 : i32
    %35 = arith.cmpi eq, %arg1, %c0_i32_18 : i32
    %36 = arith.extui %35 : i1 to i32
    %c0_i32_19 = arith.constant 0 : i32
    %37 = arith.cmpi ne, %36, %c0_i32_19 : i32
    scf.if %37 {
      %c0_20 = arith.constant 0 : index
      %c0_21 = arith.constant 0 : index
      %38 = vector.load %arg7[%c0_20, %c0_21] : memref<128x16xf32, #tpu.memory_space<vmem>>, vector<128x8xf32>
      tpu.vector_store %arg7[%c0_20, %c0_21], %29 {strides = array<i32>} : memref<128x16xf32, #tpu.memory_space<vmem>>, vector<128x8xf32>,
      %c0_22 = arith.constant 0 : index
      %c8_23 = arith.constant 8 : index
      %39 = vector.load %arg7[%c0_22, %c8_23] : memref<128x16xf32, #tpu.memory_space<vmem>>, vector<128x8xf32>
      tpu.vector_store %arg7[%c0_22, %c8_23], %27 {strides = array<i32>} : memref<128x16xf32, #tpu.memory_space<vmem>>, vector<128x8xf32>,
    } else {
    }
    return
  }
  func.func @transform_0(%arg0: i32, %arg1: i32) -> (i32, i32, i32) {
    %c0_i32 = arith.constant 0 : i32
    %c0_i32_0 = arith.constant 0 : i32
    return %arg1, %arg0, %c0_i32 : i32, i32, i32
  }
  func.func @transform_1(%arg0: i32, %arg1: i32) -> (i32, i32) {
    %c0_i32 = arith.constant 0 : i32
    %c0_i32_0 = arith.constant 0 : i32
    return %arg0, %c0_i32 : i32, i32
  }
  func.func @transform_2(%arg0: i32, %arg1: i32) -> (i32, i32) {
    %c0_i32 = arith.constant 0 : i32
    %c0_i32_0 = arith.constant 0 : i32
    %c0_i32_1 = arith.constant 0 : i32
    return %c0_i32, %c0_i32_0 : i32, i32
  }
  func.func @transform_3(%arg0: i32, %arg1: i32) -> (i32, i32) {
    %c0_i32 = arith.constant 0 : i32
    %c0_i32_0 = arith.constant 0 : i32
    %c0_i32_1 = arith.constant 0 : i32
    return %c0_i32, %c0_i32_0 : i32, i32
  }
  func.func @transform_4(%arg0: i32, %arg1: i32) -> (i32, i32, i32) {
    %c0_i32 = arith.constant 0 : i32
    %c0_i32_0 = arith.constant 0 : i32
    return %arg1, %arg0, %c0_i32 : i32, i32, i32
  }
  func.func @transform_5(%arg0: i32, %arg1: i32) -> (i32, i32) {
    %c0_i32 = arith.constant 0 : i32
    %c0_i32_0 = arith.constant 0 : i32
    return %arg0, %c0_i32 : i32, i32
  }
}

</mosaic_0001>

<bundles_post_ra>
// kernel: tpu_custom_call.1
= control target key start
LH: loop header
LB: loop body
LE: loop exit
PB: predicated region body
PF: predicated region fallthrough
CT: control target
= control target key end

     0   :  { %s2322_s18 = smov 0   ;;  %s2324_s19 = smov 0   ;;  %s3060_s0 = inlined_call_operand.vmem [shape: bf16[1,486,32], index: 0, kind: input, shape index: {}]   ;;  %s3061_s1 = inlined_call_operand.vmem [shape: f32[486,16], index: 1, kind: input, shape index: {}]   ;;  %s3062_s2 = inlined_call_operand.vmem [shape: f32[1,32], index: 2, kind: input, shape index: {}]   ;;  %s3063_s3 = inlined_call_operand.vmem [shape: bf16[8,32], index: 3, kind: input, shape index: {}]   ;;  %s3064_s4 = inlined_call_operand.vmem [shape: f32[1,486,8], index: 4, kind: output, shape index: {0}]   ;;  %s3065_s5 = inlined_call_operand.vmem [shape: f32[486,16], index: 5, kind: output, shape index: {1}]  }
   0x1   :  { %s2326_s20 = smov 0   ;;  %s2328_s21 = smov 0  }
   0x2   :  { %s2330_s22 = smov 0  }
   0x3 LB: > { %s1678_s23 = sadd.s32 4294967295, %s2223_s22   ;;  %s28_s24 = sadd.s32 1, %s2219_s21  ;;  %s2223_s22 = sphi %s2330_s22, %s16_s22   ;;  %s2219_s21 = sphi %s2328_s21, %s3076_s21   ;;  %s2215_s20 = sphi %s2326_s20, %s3075_s20   ;;  %s2211_s19 = sphi %s2324_s19, %s3074_s19   ;;  %s2207_s18 = sphi %s2322_s18, %s3073_s18  }
   0x4   : > { %p30_p0 = scmp.ge.s32.totalorder %s28_s24, 4  ;;  %s133_s25 = sadd.s32 1, %s2211_s19 }
   0x5   : > { %p143_p1 = scmp.ne.s32.totalorder %s2211_s19, %s2207_s18  ;;  %p144_p2 = scmp.eq.s32.totalorder %s1678_s23, 3 }
   0x6   : > { %s3078_s24 = smov (%p30_p0, %s28_s24), 0  ;;  %p1682_p4 = scmp.ge.s32.totalorder %s2223_s22, 1 }
   0x7   : > { %p2354_p3 = por %p144_p2, %p143_p1  ;;  %s129_s27 = ssub.s32 %s2219_s21, %s3078_s24 }
   0x8   : > { %p238_p5 = scmp.lt.s32.totalorder %s2223_s22, 5  ;;  %p131_p6 = scmp.eq.s32.totalorder %s129_s27, 0 }
   0xa   : > { %p239_p7 = pnand %p1682_p4, %p238_p5 }
   0xb   : > { %s2363_s28 = scalar_select %p131_p6, %s2211_s19, %s133_s25  }
   0xc   : > { %242 = sbr.rel (%p239_p7) target bundleno = 915 (0x393), region = 36  ;;  %v445_v0 = vld [vmem:[%s3063_s3] sm:$0xf] (!%p239_p7)  ;;  %vm471_vm0 = vcmask (!%p239_p7), 1043456   ;;  %s2369_s6 = sshll.u32 (!%p239_p7), %s2215_s20, 4  ;;  %vm349_vm1 = vcmask (!%p239_p7), 130048  }
   0xd   : > { %1820 = vmatprep.subr.msk.bf16.mxu0 (!%p239_p7), %vm471_vm0, %v445_v0  ;;  %1821 = vmatprep.subr.msk.bf16.mxu1 (!%p239_p7), %vm471_vm0, %v445_v0  ;;  %v473_v1 = vsel (!%p239_p7), %vm471_vm0, %v445_v0, 0  ;;  %p293_p8 = scmp.lt.s32.totalorder (!%p239_p7), %s2369_s6, 60  ;;  %vm446_vm2 = vcmask (!%p239_p7), 64512   ;;  %v2458_v47 = vld [vmem:[%s3062_s2] ss:$0 sm:$0xff] (!%p239_p7)  ;;  %s2289_s23 = smov (!%p239_p7), 104  }
   0xe   : > { %1801 = vmatpush3.bf16.msra.mxu0 (!%p239_p7), %v473_v1  ;;  %1819 = vmatpush3.bf16.msra.mxu1 (!%p239_p7), %v473_v1  ;;  %s2290_s25 = smov (!%p239_p7), 8   ;;  %s2291_s27 = smov (!%p239_p7), 112   ;;  %vm1052_vm3 = vcmask (!%p239_p7), 130112  }
   0xf   : > { %s277_s29 = sand.u32 (!%p239_p7), 1, %s2207_s18  }
  0x10   : > { %s1683_s30 = sshll.u32 (!%p239_p7), %s277_s29, 7 }
  0x13   : > { %s2373_s7 = scalar_select %p293_p8, %s2369_s6, 60 }
  0x14   : > { %s1132_s18 = ssub.s32 (%p2354_p3), 61, %s2369_s6  ;;  %s1746_s9 = sshll.u32 (%p2354_p3), %s2215_s20, 7 }
  0x15   : > { %s1688_s8 = sshll.u32 %s2373_s7, 3  ;;  %s1686_s12 = sshll.u32 %s2373_s7, 2 }
  0x16   : > { %s312_s11 = scalar_lea.vmem %s3061_s1, %s1688_s8  ;;  %s298_s15 = scalar_lea.vmem %s3060_s0, %s1686_s12 }
  0x17   : > { %v333_v2 = vld [vmem:[%s312_s11] sm:$0xff]  ;;  %v334_v3 = vld [vmem:[%s312_s11 + $0x8] sm:$0xff]  ;;  %v335_v6 = vld [vmem:[%s312_s11 + $0x10] sm:$0xff]  ;;  %s2702_s7 = scalar_lea.vmem [#allocation3], %s1683_s30   ;;  %s2706_s8 = scalar_lea.vmem [#allocation4], %s1683_s30  }
  0x18   : > { %v341_v4 = vld [vmem:[%s312_s11 + $0x40] sm:$0xff]  ;;  %350 = vst.msk [vmem:[#allocation2] sm:$0xff] %vm349_vm1, %v333_v2  ;;  %351 = vst.msk [vmem:[#allocation2 + $0x8] sm:$0xff] %vm349_vm1, %v334_v3  ;;  %v342_v5 = vld [vmem:[%s312_s11 + $0x48] sm:$0xff]  ;;  %p1133_p9 = scmp.lt.s32.totalorder (%p2354_p3), %s1132_s18, 16  ;;  %s2872_s12 = scalar_lea.vmem (%p2354_p3), %s3064_s4, %s1746_s9  }
  0x19   : > { %358 = vst.msk [vmem:[#allocation2 + $0x40] sm:$0xff] %vm349_vm1, %v341_v4  ;;  %v336_v7 = vld [vmem:[%s312_s11 + $0x18] sm:$0xff]  ;;  %359 = vst.msk [vmem:[#allocation2 + $0x48] sm:$0xff] %vm349_vm1, %v342_v5  ;;  %v343_v8 = vld [vmem:[%s312_s11 + $0x50] sm:$0xff] }
  0x1a   : > { %352 = vst.msk [vmem:[#allocation2 + $0x10] sm:$0xff] %vm349_vm1, %v335_v6  ;;  %353 = vst.msk [vmem:[#allocation2 + $0x18] sm:$0xff] %vm349_vm1, %v336_v7  ;;  %v344_v9 = vld [vmem:[%s312_s11 + $0x58] sm:$0xff]  ;;  %v337_v10 = vld [vmem:[%s312_s11 + $0x20] sm:$0xff] }
  0x1b   : > { %360 = vst.msk [vmem:[#allocation2 + $0x50] sm:$0xff] %vm349_vm1, %v343_v8  ;;  %361 = vst.msk [vmem:[#allocation2 + $0x58] sm:$0xff] %vm349_vm1, %v344_v9  ;;  %v338_v11 = vld [vmem:[%s312_s11 + $0x28] sm:$0xff]  ;;  %v339_v12 = vld [vmem:[%s312_s11 + $0x30] sm:$0xff] }
  0x1c   : > { %354 = vst.msk [vmem:[#allocation2 + $0x20] sm:$0xff] %vm349_vm1, %v337_v10  ;;  %v340_v13 = vld [vmem:[%s312_s11 + $0x38] sm:$0xff]  ;;  %355 = vst.msk [vmem:[#allocation2 + $0x28] sm:$0xff] %vm349_vm1, %v338_v11  ;;  %v345_v14 = vld [vmem:[%s312_s11 + $0x60] sm:$0xff] }
  0x1d   : > { %356 = vst.msk [vmem:[#allocation2 + $0x30] sm:$0xff] %vm349_vm1, %v339_v12  ;;  %357 = vst.msk [vmem:[#allocation2 + $0x38] sm:$0xff] %vm349_vm1, %v340_v13  ;;  %v346_v15 = vld [vmem:[%s312_s11 + $0x68] sm:$0xff]  ;;  %v347_v16 = vld [vmem:[%s312_s11 + $0x70] sm:$0xff] }
  0x1e   : > { %362 = vst.msk [vmem:[#allocation2 + $0x60] sm:$0xff] %vm349_vm1, %v345_v14  ;;  %363 = vst.msk [vmem:[#allocation2 + $0x68] sm:$0xff] %vm349_vm1, %v346_v15  ;;  %v348_v17 = vld [vmem:[%s312_s11 + $0x78] sm:$0xff]  ;;  %v1784_v42 = vld [vmem:[%s298_s15 + $0x8] sm:$0xff]  }
  0x1f   : > { %364 = vst.msk [vmem:[#allocation2 + $0x70] sm:$0xff] %vm349_vm1, %v347_v16  ;;  %365 = vst.msk [vmem:[#allocation2 + $0x78] sm:$0xff] %vm349_vm1, %v348_v17  ;;  %v2395_v18 = vld [vmem:[#allocation2] sm:$0xff]  ;;  %v2397_v19 = vld [vmem:[#allocation2 + $0x8] sm:$0xff]  ;;  %v1758_v46 = vunpack.c.l.bf16 %v1784_v42  ;;  %v1759_v53 = vunpack.c.h.bf16 %v1784_v42 }
  0x20   : > { %v2399_v20 = vld [vmem:[#allocation2 + $0x40] sm:$0xff]  ;;  %v437_v21 = vpack.c.bf16 %v2397_v19, %v2395_v18  ;;  %v2403_v22 = vld [vmem:[#allocation2 + $0x48] sm:$0xff]  ;;  %v1786_v50 = vld [vmem:[%s298_s15 + $0x18] sm:$0xff]  }
  0x21   : > { %v2405_v23 = vld [vmem:[#allocation2 + $0x10] sm:$0xff]  ;;  %v2407_v24 = vld [vmem:[#allocation2 + $0x18] sm:$0xff]  ;;  %v441_v25 = vpack.c.bf16 %v2403_v22, %v2399_v20  ;;  %v1788_v43 = vld [vmem:[%s298_s15 + $0x28] sm:$0xff]   ;;  %v423_v57 = vadd.f32 %v1758_v46, %v2458_v47  ;;  %v1766_v58 = vunpack.c.l.bf16 %v1786_v50  ;;  %v424_v63 = vadd.f32 %v1759_v53, %v2458_v47 }
  0x22   : > { %v438_v26 = vpack.c.bf16 %v2407_v24, %v2405_v23  ;;  %v2413_v27 = vld [vmem:[#allocation2 + $0x50] sm:$0xff]  ;;  %v2415_v28 = vld [vmem:[#allocation2 + $0x58] sm:$0xff]  ;;  %1802 = vmatprep.mubr.msk.bf16.mxu0 %vm446_vm2, %v437_v21  ;;  %v1753_v44 = vld [vmem:[%s298_s15] sm:$0xff]   ;;  %v1774_v48 = vunpack.c.l.bf16 %v1788_v43  ;;  %v1775_v54 = vunpack.c.h.bf16 %v1788_v43  ;;  %v1767_v6 = vunpack.c.h.bf16 %v1786_v50 }
  0x23   : > { %v2417_v29 = vld [vmem:[#allocation2 + $0x20] sm:$0xff]  ;;  %v442_v30 = vpack.c.bf16 %v2415_v28, %v2413_v27  ;;  %v2422_v31 = vld [vmem:[#allocation2 + $0x28] sm:$0xff]  ;;  %1810 = vmatprep.mubr.msk.bf16.mxu1 %vm446_vm2, %v441_v25  ;;  %v1754_v49 = vunpack.c.l.bf16 %v1753_v44  ;;  %v1785_v51 = vld [vmem:[%s298_s15 + $0x10] sm:$0xff]   ;;  %v1755_v55 = vunpack.c.h.bf16 %v1753_v44  ;;  %v427_v10 = vadd.f32 %v1766_v58, %v2458_v47 }
  0x24   : > { %1803 = vmatmul.mubr.msk.bf16.vlgmr.msra.gmra.mrb[0].mxu0 %vm446_vm2, %v438_v26  ;;  %v439_v32 = vpack.c.bf16 %v2422_v31, %v2417_v29  ;;  %v2433_v35 = vld [vmem:[#allocation2 + $0x30] sm:$0xff]  ;;  %v2435_v36 = vld [vmem:[#allocation2 + $0x38] sm:$0xff]  ;;  %v1787_v45 = vld [vmem:[%s298_s15 + $0x20] sm:$0xff]   ;;  %v1762_v59 = vunpack.c.l.bf16 %v1785_v51  ;;  %v431_v60 = vadd.f32 %v1774_v48, %v2458_v47  ;;  %v432_v3 = vadd.f32 %v1775_v54, %v2458_v47 }
  0x25   : > { %v2428_v33 = vld [vmem:[#allocation2 + $0x60] sm:$0xff]  ;;  %v2430_v34 = vld [vmem:[#allocation2 + $0x68] sm:$0xff]  ;;  %1811 = vmatmul.mubr.msk.bf16.vlgmr.msra.gmra.mrb[0].mxu1 %vm446_vm2, %v442_v30  ;;  %v440_v40 = vpack.c.bf16 %v2435_v36, %v2433_v35  ;;  %v1770_v52 = vunpack.c.l.bf16 %v1787_v45  ;;  %v1771_v56 = vunpack.c.h.bf16 %v1787_v45  ;;  %v421_v61 = vadd.f32 %v1754_v49, %v2458_v47  ;;  %v1790_v0 = vld [vmem:[%s298_s15 + $0x38] sm:$0xff]  }
  0x26   : > { %v443_v37 = vpack.c.bf16 %v2430_v34, %v2428_v33  ;;  %1806 = vmatprep.mubr.msk.bf16.mxu0 %vm446_vm2, %v439_v32  ;;  %v2440_v38 = vld [vmem:[#allocation2 + $0x70] sm:$0xff]  ;;  %v2442_v39 = vld [vmem:[#allocation2 + $0x78] sm:$0xff]  ;;  %v422_v4 = vadd.f32 %v1755_v55, %v2458_v47  ;;  %v425_v11 = vadd.f32 %v1762_v59, %v2458_v47  ;;  %v1763_v12 = vunpack.c.h.bf16 %v1785_v51 }
  0x27   : > { %v444_v41 = vpack.c.bf16 %v2442_v39, %v2440_v38  ;;  %v429_v62 = vadd.f32 %v1770_v52, %v2458_v47  ;;  %v1789_v1 = vld [vmem:[%s298_s15 + $0x30] sm:$0xff]   ;;  %v430_v5 = vadd.f32 %v1771_v56, %v2458_v47  ;;  %v1782_v17 = vunpack.c.l.bf16 %v1790_v0 }
  0x28   : > { %1814 = vmatprep.mubr.msk.bf16.mxu1 %vm446_vm2, %v443_v37  ;;  %v1778_v21 = vunpack.c.l.bf16 %v1789_v1  ;;  %v1779_v52 = vunpack.c.h.bf16 %v1789_v1  ;;  %v428_v54 = vadd.f32 %v1767_v6, %v2458_v47  ;;  %v426_v58 = vadd.f32 %v1763_v12, %v2458_v47 }
  0x29   : > { %v435_v51 = vadd.f32 %v1782_v17, %v2458_v47 }
  0x2a   : > { %v433_v55 = vadd.f32 %v1778_v21, %v2458_v47 }
  0x2c   : > { %1807 = vmatmul.mubr.msk.bf16.gmra.mrb[4].mxu0 %vm446_vm2, %v440_v40  ;;  %v1783_v40 = vunpack.c.h.bf16 %v1790_v0 }
  0x2d   : > { %1815 = vmatmul.mubr.msk.bf16.gmra.mrb[4].mxu1 %vm446_vm2, %v444_v41 }
  0xf7   : > { %v1804_v2 = vpop.f32.mrb[0].mxu0 }
  0xf8   : > { %v574_v7 = vadd.f32 %v1804_v2, %v423_v57  ;;  %v1812_v8 = vpop.f32.mrb[0].mxu1  ;;  %v509_v9 = vpop.f32.mrb[1].mxu0 }
  0xf9   : > { %v582_v13 = vadd.f32 %v1812_v8, %v431_v60  ;;  %v572_v14 = vadd.f32 %v509_v9, %v421_v61  ;;  %v541_v15 = vpop.f32.mrb[1].mxu1  ;;  %v1805_v16 = vpop.f32.mrb[2].mxu0 }
  0xfa   : > { %v1700_v25 = vmul.f32 -1.442695, %v574_v7  ;;  %v580_v26 = vadd.f32 %v541_v15, %v429_v62  ;;  %v575_v30 = vadd.f32 %v1805_v16, %v424_v63  ;;  %v1813_v32 = vpop.f32.mrb[2].mxu1  ;;  %v512_v37 = vpop.f32.mrb[3].mxu0  ;;  %v436_v62 = vadd.f32 %v1783_v40, %v2458_v47 }
  0xfb   : > { %v1708_v41 = vmul.f32 -1.442695, %v582_v13  ;;  %v1698_v42 = vmul.f32 -1.442695, %v572_v14  ;;  %v583_v43 = vadd.f32 %v1813_v32, %v432_v3  ;;  %v573_v44 = vadd.f32 %v512_v37, %v422_v4  ;;  %v544_v45 = vpop.f32.mrb[3].mxu1 }
  0xfc   : > { %1993 = vpow2.f32 %v1700_v25  ;;  %v1706_v46 = vmul.f32 -1.442695, %v580_v26  ;;  %v1701_v48 = vmul.f32 -1.442695, %v575_v30  ;;  %v581_v49 = vadd.f32 %v544_v45, %v430_v5 }
  0xfd   : > { %1995 = vpow2.f32 %v1708_v41  ;;  %v1709_v50 = vmul.f32 -1.442695, %v583_v43  ;;  %v1699_v53 = vmul.f32 -1.442695, %v573_v44  ;;  %v434_v3 = vadd.f32 %v1779_v52, %v2458_v47 }
  0xfe   : > { %1997 = vpow2.f32 %v1698_v42  ;;  %v1707_v56 = vmul.f32 -1.442695, %v581_v49 }
  0xff   : > { %1999 = vpow2.f32 %v1706_v46  ;;  %v1808_v57 = vpop.f32.mrb[4].mxu0 }
 0x100   : > { %2001 = vpow2.f32 %v1701_v48  ;;  %v578_v59 = vadd.f32 %v1808_v57, %v427_v10  ;;  %v525_v60 = vpop.f32.mrb[5].mxu0  ;;  %v1816_v61 = vpop.f32.mrb[4].mxu1 }
 0x101   : > { %2003 = vpow2.f32 %v1709_v50  ;;  %v576_v63 = vadd.f32 %v525_v60, %v425_v11  ;;  %v1809_v0 = vpop.f32.mrb[6].mxu0  ;;  %v586_v1 = vadd.f32 %v1816_v61, %v435_v51  ;;  %v557_v2 = vpop.f32.mrb[5].mxu1 }
 0x102   : > { %2005 = vpow2.f32 %v1699_v53  ;;  %v1704_v4 = vmul.f32 -1.442695, %v578_v59  ;;  %v579_v5 = vadd.f32 %v1809_v0, %v428_v54  ;;  %v528_v6 = vpop.f32.mrb[7].mxu0  ;;  %v584_v7 = vadd.f32 %v557_v2, %v433_v55  ;;  %v1817_v8 = vpop.f32.mrb[6].mxu1 }
 0x103   : > { %2007 = vpow2.f32 %v1707_v56  ;;  %v577_v9 = vadd.f32 %v528_v6, %v426_v58  ;;  %v560_v10 = vpop.f32.mrb[7].mxu1  ;;  %v587_v12 = vadd.f32 %v1817_v8, %v436_v62  ;;  %v1702_v13 = vmul.f32 -1.442695, %v576_v63 }
 0x104   : > { %2009 = vpow2.f32 %v1704_v4  ;;  %v585_v14 = vadd.f32 %v560_v10, %v434_v3  ;;  %v1705_v11 = vmul.f32 -1.442695, %v579_v5  ;;  %v1712_v32 = vmul.f32 -1.442695, %v586_v1 }
 0x105   : > { %v1703_v17 = vmul.f32 -1.442695, %v577_v9  ;;  %2011 = vpow2.f32 %v1702_v13  ;;  %v1710_v51 = vmul.f32 -1.442695, %v584_v7  ;;  %v1713_v53 = vmul.f32 -1.442695, %v587_v12 }
 0x106   : > { %v1994_v15 = vpop.eup %1993  ;;  %2013 = vpow2.f32 %v1705_v11  ;;  %v1711_v55 = vmul.f32 -1.442695, %v585_v14 }
 0x107   : > { %v1996_v16 = vpop.eup %1995  ;;  %v638_v26 = vadd.f32 1.0, %v1994_v15  ;;  %2015 = vpow2.f32 %v1703_v17 }
 0x108   : > { %v1998_v21 = vpop.eup %1997  ;;  %v646_v25 = vadd.f32 1.0, %v1996_v16 }
 0x109   : > { %v2000_v47 = vpop.eup %1999  ;;  %v636_v40 = vadd.f32 1.0, %v1998_v21 }
 0x10a   : > { %v2002_v30 = vpop.eup %2001  ;;  %2017 = vrcp.f32 %v646_v25  ;;  %v644_v42 = vadd.f32 1.0, %v2000_v47 }
 0x10b   : > { %v2004_v37 = vpop.eup %2003  ;;  %2019 = vrcp.f32 %v638_v26  ;;  %v639_v44 = vadd.f32 1.0, %v2002_v30 }
 0x10c   : > { %v2006_v41 = vpop.eup %2005  ;;  %v647_v46 = vadd.f32 1.0, %v2004_v37  ;;  %2021 = vpow2.f32 %v1712_v32 }
 0x10d   : > { %v2008_v43 = vpop.eup %2007  ;;  %2023 = vrcp.f32 %v636_v40  ;;  %v637_v48 = vadd.f32 1.0, %v2006_v41 }
 0x10e   : > { %v2010_v45 = vpop.eup %2009  ;;  %2025 = vrcp.f32 %v644_v42  ;;  %v645_v49 = vadd.f32 1.0, %v2008_v43 }
 0x10f   : > { %2027 = vrcp.f32 %v639_v44  ;;  %v642_v50 = vadd.f32 1.0, %v2010_v45  ;;  %v2012_v52 = vpop.eup %2011 }
 0x110   : > { %2029 = vrcp.f32 %v647_v46  ;;  %v2014_v54 = vpop.eup %2013  ;;  %v640_v61 = vadd.f32 1.0, %v2012_v52 }
 0x111   : > { %2031 = vrcp.f32 %v637_v48  ;;  %v2016_v56 = vpop.eup %2015  ;;  %v643_v59 = vadd.f32 1.0, %v2014_v54 }
 0x112   : > { %2033 = vrcp.f32 %v645_v49  ;;  %v641_v1 = vadd.f32 1.0, %v2016_v56 }
 0x113   : > { %2035 = vrcp.f32 %v642_v50 }
 0x114   : > { %v2476_v57 = vpop.eup %2017  ;;  %2037 = vpow2.f32 %v1710_v51 }
 0x115   : > { %v2478_v58 = vpop.eup %2019  ;;  %2039 = vpow2.f32 %v1713_v53 }
 0x116   : > { %v2022_v60 = vpop.eup %2021  ;;  %2041 = vpow2.f32 %v1711_v55 }
 0x117   : > { %v2480_v62 = vpop.eup %2023  ;;  %2043 = vtanh.f32 %v2476_v57  ;;  %v650_v3 = vadd.f32 1.0, %v2022_v60 }
 0x118   : > { %v2483_v63 = vpop.eup %2025  ;;  %2045 = vtanh.f32 %v2478_v58 }
 0x119   : > { %v2486_v0 = vpop.eup %2027  ;;  %2047 = vrcp.f32 %v643_v59 }
 0x11a   : > { %v2488_v2 = vpop.eup %2029  ;;  %2049 = vrcp.f32 %v640_v61 }
 0x11b   : > { %v2490_v4 = vpop.eup %2031  ;;  %2051 = vtanh.f32 %v2480_v62 }
 0x11c   : > { %v2493_v5 = vpop.eup %2033  ;;  %2053 = vtanh.f32 %v2486_v0 }
 0x11d   : > { %v2496_v6 = vpop.eup %2035  ;;  %2055 = vrcp.f32 %v641_v1 }
 0x11e   : > { %v2038_v7 = vpop.eup %2037  ;;  %2057 = vrcp.f32 %v650_v3 }
 0x11f   : > { %v2040_v8 = vpop.eup %2039  ;;  %v648_v9 = vadd.f32 1.0, %v2038_v7  ;;  %2059 = vtanh.f32 %v2483_v63 }
 0x120   : > { %v2042_v10 = vpop.eup %2041  ;;  %2061 = vtanh.f32 %v2488_v2  ;;  %v651_v11 = vadd.f32 1.0, %v2040_v8 }
 0x121   : > { %v2044_v12 = vpop.eup %2043  ;;  %2063 = vrcp.f32 %v648_v9  ;;  %v649_v13 = vadd.f32 1.0, %v2042_v10 }
 0x122   : > { %v2046_v14 = vpop.eup %2045  ;;  %752 = vrot.lane.b32.xlu0 %v2044_v12, %s2289_s23  ;;  %2065 = vtanh.f32 %v2490_v4 }
 0x123   : > { %v2502_v15 = vpop.eup %2047  ;;  %2067 = vrcp.f32 %v649_v13  ;;  %736 = vrot.lane.b32.xlu1 %v2046_v14, %s2289_s23 }
 0x124   : > { %v2505_v16 = vpop.eup %2049  ;;  %2069 = vtanh.f32 %v2493_v5 }
 0x125   : > { %v2052_v17 = vpop.eup %2051  ;;  %2071 = vtanh.f32 %v2496_v6 }
 0x126   : > { %v2054_v21 = vpop.eup %2053  ;;  %732 = vrot.lane.b32.xlu0 %v2052_v17, %s2289_s23  ;;  %2073 = vtanh.f32 %v2502_v15 }
 0x127   : > { %v2511_v25 = vpop.eup %2055  ;;  %2075 = vrcp.f32 %v651_v11  ;;  %738 = vrot.lane.b32.xlu1 %v2054_v21, %s2289_s23 }
 0x128   : > { %v2514_v47 = vpop.eup %2057  ;;  %2077 = vtanh.f32 %v2505_v16 }
 0x129   : > { %v2060_v26 = vpop.eup %2059  ;;  %2079 = vtanh.f32 %v2511_v25 }
 0x12a   : > { %v2062_v30 = vpop.eup %2061  ;;  %748 = vrot.lane.b32.xlu0 %v2060_v26, %s2289_s23 }
 0x12b   : > { %v2517_v32 = vpop.eup %2063  ;;  %754 = vrot.lane.b32.xlu1 %v2062_v30, %s2289_s23 }
 0x12c   : > { %v2066_v37 = vpop.eup %2065  ;;  %2081 = vtanh.f32 %v2517_v32 }
 0x12d   : > { %v2522_v40 = vpop.eup %2067 }
 0x12e   : > { %v2070_v41 = vpop.eup %2069  ;;  %734 = vrot.lane.b32.xlu0 %v2066_v37, %s2289_s23  ;;  %2083 = vtanh.f32 %v2522_v40 }
 0x12f   : > { %v2072_v42 = vpop.eup %2071  ;;  %750 = vrot.lane.b32.xlu1 %v2070_v41, %s2289_s23  ;;  %2085 = vtanh.f32 %v2514_v47 }
 0x130   : > { %v2074_v43 = vpop.eup %2073 }
 0x131   : > { %v2528_v44 = vpop.eup %2075 }
 0x132   : > { %744 = vrot.lane.b32.xlu0 %v2072_v42, %s2289_s23  ;;  %2087 = vtanh.f32 %v2528_v44  ;;  %v2078_v45 = vpop.eup %2077 }
 0x133   : > { %746 = vrot.lane.b32.xlu1 %v2074_v43, %s2289_s23  ;;  %v2080_v46 = vpop.eup %2079 }
 0x136   : > { %740 = vrot.lane.b32.xlu0 %v2078_v45, %s2289_s23  ;;  %v2082_v48 = vpop.eup %2081 }
 0x137   : > { %742 = vrot.lane.b32.xlu1 %v2080_v46, %s2289_s23 }
 0x138   : > { %v2084_v49 = vpop.eup %2083 }
 0x139   : > { %v2086_v50 = vpop.eup %2085 }
 0x13a   : > { %756 = vrot.lane.b32.xlu0 %v2082_v48, %s2289_s23 }
 0x13b   : > { %758 = vrot.lane.b32.xlu1 %v2084_v49, %s2289_s23 }
 0x13c   : > { %v2088_v51 = vpop.eup %2087 }
 0x13e   : > { %760 = vrot.lane.b32.xlu0 %v2086_v50, %s2289_s23 }
 0x13f   : > { %762 = vrot.lane.b32.xlu1 %v2088_v51, %s2289_s23 }
 0x194   : > { %v753_v52 = vpop.permute.xlu0 %752 }
 0x195   : > { %v737_v53 = vpop.permute.xlu1 %736  ;;  %v790_v59 = vmul.f32 %v2476_v57, %v753_v52  ;;  %v686_v52 = vmul.f32 %v2478_v58, %v2405_v23  ;;  %v695_v23 = vmul.f32 %v2488_v2, %v2415_v28 }
 0x196   : > { %v782_v54 = vmul.f32 %v2478_v58, %v737_v53 }
 0x198   : > { %816 = vrot.lane.b32.xlu0 %v782_v54, %s2290_s25  ;;  %v733_v55 = vpop.permute.xlu0 %732 }
 0x199   : > { %v739_v56 = vpop.permute.xlu1 %738  ;;  %v780_v3 = vmul.f32 %v2480_v62, %v733_v55  ;;  %v687_v55 = vmul.f32 %v2486_v0, %v2407_v24 }
 0x19a   : > { %v783_v60 = vmul.f32 %v2486_v0, %v739_v56  ;;  %v694_v56 = vmul.f32 %v2476_v57, %v2413_v27 }
 0x19c   : > { %818 = vrot.lane.b32.xlu1 %v783_v60, %s2290_s25  ;;  %832 = vrot.lane.b32.xlu0 %v790_v59, %s2290_s25  ;;  %v749_v61 = vpop.permute.xlu0 %748 }
 0x19d   : > { %v755_v1 = vpop.permute.xlu1 %754  ;;  %v788_v12 = vmul.f32 %v2483_v63, %v749_v61 }
 0x19e   : > { %v791_v7 = vmul.f32 %v2488_v2, %v755_v1 }
 0x1a0   : > { %834 = vrot.lane.b32.xlu1 %v791_v7, %s2290_s25  ;;  %812 = vrot.lane.b32.xlu0 %v780_v3, %s2290_s25  ;;  %v735_v8 = vpop.permute.xlu0 %734  ;;  %v684_v3 = vmul.f32 %v2480_v62, %v2395_v18 }
 0x1a1   : > { %v751_v9 = vpop.permute.xlu1 %750  ;;  %v781_v10 = vmul.f32 %v2490_v4, %v735_v8 }
 0x1a2   : > { %v789_v17 = vmul.f32 %v2493_v5, %v751_v9  ;;  %v685_v9 = vmul.f32 %v2490_v4, %v2397_v19  ;;  %v690_v19 = vmul.f32 %v2496_v6, %v2433_v35  ;;  %v688_v35 = vmul.f32 %v2505_v16, %v2417_v29 }
 0x1a3   : > { %v696_v29 = vmul.f32 %v2517_v32, %v2428_v33  ;;  %v698_v33 = vmul.f32 %v2514_v47, %v2440_v38 }
 0x1a4   : > { %828 = vrot.lane.b32.xlu0 %v788_v12, %s2290_s25  ;;  %814 = vrot.lane.b32.xlu1 %v781_v10, %s2290_s25  ;;  %v745_v13 = vpop.permute.xlu0 %744  ;;  %v692_v10 = vmul.f32 %v2483_v63, %v2399_v20 }
 0x1a5   : > { %v747_v14 = vpop.permute.xlu1 %746  ;;  %v786_v11 = vmul.f32 %v2496_v6, %v745_v13 }
 0x1a6   : > { %v787_v37 = vmul.f32 %v2502_v15, %v747_v14 }
 0x1a8   : > { %830 = vrot.lane.b32.xlu1 %v789_v17, %s2290_s25  ;;  %824 = vrot.lane.b32.xlu0 %v786_v11, %s2290_s25  ;;  %v741_v21 = vpop.permute.xlu0 %740  ;;  %v693_v11 = vmul.f32 %v2493_v5, %v2403_v22  ;;  %v691_v22 = vmul.f32 %v2502_v15, %v2435_v36  ;;  %v689_v36 = vmul.f32 %v2511_v25, %v2422_v31 }
 0x1a9   : > { %v743_v26 = vpop.permute.xlu1 %742  ;;  %v784_v30 = vmul.f32 %v2505_v16, %v741_v21  ;;  %v697_v31 = vmul.f32 %v2522_v40, %v2430_v34  ;;  %v699_v34 = vmul.f32 %v2528_v44, %v2442_v39 }
 0x1aa   : > { %v785_v45 = vmul.f32 %v2511_v25, %v743_v26 }
 0x1ac   : > { %826 = vrot.lane.b32.xlu1 %v787_v37, %s2290_s25  ;;  %820 = vrot.lane.b32.xlu0 %v784_v30, %s2290_s25  ;;  %v757_v41 = vpop.permute.xlu0 %756 }
 0x1ad   : > { %v759_v42 = vpop.permute.xlu1 %758  ;;  %v792_v43 = vmul.f32 %v2517_v32, %v757_v41 }
 0x1ae   : > { %v793_v49 = vmul.f32 %v2522_v40, %v759_v42 }
 0x1b0   : > { %822 = vrot.lane.b32.xlu1 %v785_v45, %s2290_s25  ;;  %836 = vrot.lane.b32.xlu0 %v792_v43, %s2290_s25  ;;  %v761_v46 = vpop.permute.xlu0 %760 }
 0x1b1   : > { %v794_v48 = vmul.f32 %v2514_v47, %v761_v46  ;;  %v763_v50 = vpop.permute.xlu1 %762 }
 0x1b2   : > { %v795_v51 = vmul.f32 %v2528_v44, %v763_v50 }
 0x1b4   : > { %838 = vrot.lane.b32.xlu1 %v793_v49, %s2290_s25  ;;  %840 = vrot.lane.b32.xlu0 %v794_v48, %s2290_s25 }
 0x1b8   : > { %842 = vrot.lane.b32.xlu1 %v795_v51, %s2290_s25 }
 0x20a   : > { %v817_v53 = vpop.permute.xlu0 %816 }
 0x20b   : > { %v2574_v54 = vadd.f32 %v817_v53, %v686_v52 }
 0x20d   : > { %2089 = vtanh.f32 %v2574_v54 }
 0x20e   : > { %v819_v59 = vpop.permute.xlu1 %818  ;;  %v833_v60 = vpop.permute.xlu0 %832 }
 0x20f   : > { %v2581_v61 = vadd.f32 %v819_v59, %v687_v55  ;;  %v2583_v1 = vadd.f32 %v833_v60, %v694_v56 }
 0x211   : > { %2091 = vtanh.f32 %v2581_v61 }
 0x212   : > { %2093 = vtanh.f32 %v2583_v1  ;;  %v835_v24 = vpop.permute.xlu1 %834  ;;  %v813_v7 = vpop.permute.xlu0 %812 }
 0x213   : > { %v2591_v8 = vadd.f32 %v835_v24, %v695_v23  ;;  %v2593_v27 = vadd.f32 %v813_v7, %v684_v3 }
 0x215   : > { %2095 = vtanh.f32 %v2591_v8 }
 0x216   : > { %2097 = vtanh.f32 %v2593_v27  ;;  %v815_v28 = vpop.permute.xlu1 %814  ;;  %v829_v18 = vpop.permute.xlu0 %828 }
 0x217   : > { %v2090_v12 = vpop.eup %2089  ;;  %v2601_v13 = vadd.f32 %v815_v28, %v685_v9  ;;  %v2603_v14 = vadd.f32 %v829_v18, %v692_v10 }
 0x218   : > { %912 = vrot.lane.b32.xlu0 %v2090_v12, %s2290_s25 }
 0x219   : > { %2099 = vtanh.f32 %v2601_v13 }
 0x21a   : > { %2101 = vtanh.f32 %v2603_v14  ;;  %v831_v20 = vpop.permute.xlu1 %830  ;;  %v825_v17 = vpop.permute.xlu0 %824 }
 0x21b   : > { %v2092_v21 = vpop.eup %2091  ;;  %v2612_v26 = vadd.f32 %v831_v20, %v693_v11  ;;  %v2614_v30 = vadd.f32 %v825_v17, %v690_v19 }
 0x21c   : > { %v2094_v37 = vpop.eup %2093  ;;  %914 = vrot.lane.b32.xlu1 %v2092_v21, %s2290_s25 }
 0x21d   : > { %2103 = vtanh.f32 %v2612_v26  ;;  %928 = vrot.lane.b32.xlu0 %v2094_v37, %s2290_s25 }
 0x21e   : > { %2105 = vtanh.f32 %v2614_v30  ;;  %v827_v41 = vpop.permute.xlu1 %826  ;;  %v821_v42 = vpop.permute.xlu0 %820 }
 0x21f   : > { %v2096_v43 = vpop.eup %2095  ;;  %v2624_v45 = vadd.f32 %v827_v41, %v691_v22  ;;  %v2626_v46 = vadd.f32 %v821_v42, %v688_v35 }
 0x220   : > { %v2098_v48 = vpop.eup %2097  ;;  %930 = vrot.lane.b32.xlu1 %v2096_v43, %s2290_s25 }
 0x221   : > { %2107 = vtanh.f32 %v2624_v45  ;;  %908 = vrot.lane.b32.xlu0 %v2098_v48, %s2290_s25 }
 0x222   : > { %2109 = vtanh.f32 %v2626_v46  ;;  %v823_v49 = vpop.permute.xlu1 %822  ;;  %v837_v50 = vpop.permute.xlu0 %836 }
 0x223   : > { %v2100_v51 = vpop.eup %2099  ;;  %v2636_v52 = vadd.f32 %v823_v49, %v689_v36  ;;  %v2638_v53 = vadd.f32 %v837_v50, %v696_v29 }
 0x224   : > { %v2102_v55 = vpop.eup %2101  ;;  %910 = vrot.lane.b32.xlu1 %v2100_v51, %s2290_s25 }
 0x225   : > { %2111 = vtanh.f32 %v2636_v52  ;;  %924 = vrot.lane.b32.xlu0 %v2102_v55, %s2290_s25 }
 0x226   : > { %2113 = vtanh.f32 %v2638_v53  ;;  %v839_v56 = vpop.permute.xlu1 %838  ;;  %v841_v59 = vpop.permute.xlu0 %840 }
 0x227   : > { %v2104_v60 = vpop.eup %2103  ;;  %v2648_v23 = vadd.f32 %v839_v56, %v697_v31  ;;  %v2650_v3 = vadd.f32 %v841_v59, %v698_v33 }
 0x228   : > { %v2106_v24 = vpop.eup %2105  ;;  %926 = vrot.lane.b32.xlu1 %v2104_v60, %s2290_s25 }
 0x229   : > { %2115 = vtanh.f32 %v2648_v23  ;;  %920 = vrot.lane.b32.xlu0 %v2106_v24, %s2290_s25 }
 0x22a   : > { %2117 = vtanh.f32 %v2650_v3  ;;  %v843_v38 = vpop.permute.xlu1 %842 }
 0x22b   : > { %v2108_v7 = vpop.eup %2107  ;;  %v2658_v9 = vadd.f32 %v843_v38, %v699_v34 }
 0x22c   : > { %v2110_v10 = vpop.eup %2109  ;;  %922 = vrot.lane.b32.xlu1 %v2108_v7, %s2290_s25 }
 0x22d   : > { %2119 = vtanh.f32 %v2658_v9  ;;  %916 = vrot.lane.b32.xlu0 %v2110_v10, %s2290_s25 }
 0x22f   : > { %v2112_v28 = vpop.eup %2111 }
 0x230   : > { %v2114_v18 = vpop.eup %2113  ;;  %918 = vrot.lane.b32.xlu1 %v2112_v28, %s2290_s25 }
 0x231   : > { %932 = vrot.lane.b32.xlu0 %v2114_v18, %s2290_s25 }
 0x233   : > { %v2116_v39 = vpop.eup %2115 }
 0x234   : > { %v2118_v12 = vpop.eup %2117  ;;  %934 = vrot.lane.b32.xlu1 %v2116_v39, %s2290_s25 }
 0x235   : > { %936 = vrot.lane.b32.xlu0 %v2118_v12, %s2290_s25 }
 0x237   : > { %v2120_v11 = vpop.eup %2119 }
 0x238   : > { %938 = vrot.lane.b32.xlu1 %v2120_v11, %s2290_s25 }
 0x28a   : > { %v913_v19 = vpop.permute.xlu0 %912 }
 0x28b   : > { %v958_v20 = vmul.f32 %v2478_v58, %v913_v19 }
 0x28d   : > { %992 = vrot.lane.b32.xlu0 %v958_v20, %s2291_s27 }
 0x28e   : > { %v915_v17 = vpop.permute.xlu1 %914 }
 0x28f   : > { %v959_v21 = vmul.f32 %v2486_v0, %v915_v17  ;;  %v929_v37 = vpop.permute.xlu0 %928 }
 0x290   : > { %v966_v22 = vmul.f32 %v2476_v57, %v929_v37 }
 0x291   : > { %994 = vrot.lane.b32.xlu1 %v959_v21, %s2291_s27 }
 0x292   : > { %1008 = vrot.lane.b32.xlu0 %v966_v22, %s2291_s27  ;;  %v931_v35 = vpop.permute.xlu1 %930 }
 0x293   : > { %v967_v41 = vmul.f32 %v2488_v2, %v931_v35  ;;  %v909_v42 = vpop.permute.xlu0 %908 }
 0x294   : > { %v956_v43 = vmul.f32 %v2480_v62, %v909_v42 }
 0x295   : > { %1010 = vrot.lane.b32.xlu1 %v967_v41, %s2291_s27 }
 0x296   : > { %988 = vrot.lane.b32.xlu0 %v956_v43, %s2291_s27  ;;  %v911_v58 = vpop.permute.xlu1 %910 }
 0x297   : > { %v957_v0 = vmul.f32 %v2490_v4, %v911_v58  ;;  %v925_v48 = vpop.permute.xlu0 %924 }
 0x298   : > { %v964_v57 = vmul.f32 %v2483_v63, %v925_v48 }
 0x299   : > { %990 = vrot.lane.b32.xlu1 %v957_v0, %s2291_s27 }
 0x29a   : > { %1004 = vrot.lane.b32.xlu0 %v964_v57, %s2291_s27  ;;  %v927_v36 = vpop.permute.xlu1 %926 }
 0x29b   : > { %v965_v2 = vmul.f32 %v2493_v5, %v927_v36  ;;  %v921_v29 = vpop.permute.xlu0 %920 }
 0x29c   : > { %v962_v62 = vmul.f32 %v2496_v6, %v921_v29 }
 0x29d   : > { %1006 = vrot.lane.b32.xlu1 %v965_v2, %s2291_s27 }
 0x29e   : > { %1000 = vrot.lane.b32.xlu0 %v962_v62, %s2291_s27  ;;  %v923_v49 = vpop.permute.xlu1 %922 }
 0x29f   : > { %v963_v4 = vmul.f32 %v2502_v15, %v923_v49  ;;  %v917_v50 = vpop.permute.xlu0 %916 }
 0x2a0   : > { %v960_v63 = vmul.f32 %v2505_v16, %v917_v50 }
 0x2a1   : > { %1002 = vrot.lane.b32.xlu1 %v963_v4, %s2291_s27 }
 0x2a2   : > { %996 = vrot.lane.b32.xlu0 %v960_v63, %s2291_s27  ;;  %v919_v51 = vpop.permute.xlu1 %918 }
 0x2a3   : > { %v961_v5 = vmul.f32 %v2511_v25, %v919_v51  ;;  %v933_v55 = vpop.permute.xlu0 %932 }
 0x2a4   : > { %v968_v6 = vmul.f32 %v2517_v32, %v933_v55 }
 0x2a5   : > { %998 = vrot.lane.b32.xlu1 %v961_v5, %s2291_s27 }
 0x2a6   : > { %1012 = vrot.lane.b32.xlu0 %v968_v6, %s2291_s27  ;;  %v935_v31 = vpop.permute.xlu1 %934 }
 0x2a7   : > { %v969_v15 = vmul.f32 %v2522_v40, %v935_v31  ;;  %v937_v33 = vpop.permute.xlu0 %936 }
 0x2a8   : > { %v970_v16 = vmul.f32 %v2514_v47, %v937_v33 }
 0x2a9   : > { %1014 = vrot.lane.b32.xlu1 %v969_v15, %s2291_s27 }
 0x2aa   : > { %1016 = vrot.lane.b32.xlu0 %v970_v16, %s2291_s27  ;;  %v939_v56 = vpop.permute.xlu1 %938 }
 0x2ab   : > { %v971_v25 = vmul.f32 %v2528_v44, %v939_v56 }
 0x2ad   : > { %1018 = vrot.lane.b32.xlu1 %v971_v25, %s2291_s27 }
 0x2ff   : > { %v993_v32 = vpop.permute.xlu0 %992 }
 0x300   : > { %1038 = vst.msk [vmem:[#allocation2 + $0x10] sm:$0xff] %vm446_vm2, %v993_v32  ;;  %1071 = vst.msk [vmem:[%s2702_s7 + $0x10] sm:$0xff] %vm446_vm2, %v993_v32 }
 0x301   : > { %1090 = vst.msk [vmem:[%s2706_s8 + $0x10] sm:$0xff] %vm446_vm2, %v993_v32 }
 0x302   : > { %1055 = vst.msk [vmem:[#allocation2 + $0x10] sm:$0xff] %vm1052_vm3, %v2574_v54  ;;  %1106 = vst.msk [vmem:[%s2706_s8 + $0x10] sm:$0xff] %vm1052_vm3, %v2574_v54 }
 0x303   : > { %v995_v47 = vpop.permute.xlu1 %994 }
 0x304   : > { %1039 = vst.msk [vmem:[#allocation2 + $0x18] sm:$0xff] %vm446_vm2, %v995_v47  ;;  %1072 = vst.msk [vmem:[%s2702_s7 + $0x18] sm:$0xff] %vm446_vm2, %v995_v47  ;;  %v1009_v40 = vpop.permute.xlu0 %1008 }
 0x305   : > { %1091 = vst.msk [vmem:[%s2706_s8 + $0x18] sm:$0xff] %vm446_vm2, %v995_v47  ;;  %1046 = vst.msk [vmem:[#allocation2 + $0x50] sm:$0xff] %vm446_vm2, %v1009_v40 }
 0x306   : > { %1056 = vst.msk [vmem:[#allocation2 + $0x18] sm:$0xff] %vm1052_vm3, %v2581_v61  ;;  %1107 = vst.msk [vmem:[%s2706_s8 + $0x18] sm:$0xff] %vm1052_vm3, %v2581_v61 }
 0x307   : > { %1079 = vst.msk [vmem:[%s2702_s7 + $0x50] sm:$0xff] %vm446_vm2, %v1009_v40  ;;  %1098 = vst.msk [vmem:[%s2706_s8 + $0x50] sm:$0xff] %vm446_vm2, %v1009_v40  ;;  %v1011_v44 = vpop.permute.xlu1 %1010 }
 0x308   : > { %1063 = vst.msk [vmem:[#allocation2 + $0x50] sm:$0xff] %vm1052_vm3, %v2583_v1  ;;  %1114 = vst.msk [vmem:[%s2706_s8 + $0x50] sm:$0xff] %vm1052_vm3, %v2583_v1  ;;  %v989_v54 = vpop.permute.xlu0 %988 }
 0x309   : > { %1047 = vst.msk [vmem:[#allocation2 + $0x58] sm:$0xff] %vm446_vm2, %v1011_v44  ;;  %1080 = vst.msk [vmem:[%s2702_s7 + $0x58] sm:$0xff] %vm446_vm2, %v1011_v44 }
 0x30a   : > { %1099 = vst.msk [vmem:[%s2706_s8 + $0x58] sm:$0xff] %vm446_vm2, %v1011_v44  ;;  %1036 = vst.msk [vmem:[#allocation2] sm:$0xff] %vm446_vm2, %v989_v54 }
 0x30b   : > { %1064 = vst.msk [vmem:[#allocation2 + $0x58] sm:$0xff] %vm1052_vm3, %v2591_v8  ;;  %1115 = vst.msk [vmem:[%s2706_s8 + $0x58] sm:$0xff] %vm1052_vm3, %v2591_v8  ;;  %v991_v61 = vpop.permute.xlu1 %990 }
 0x30c   : > { %1069 = vst.msk [vmem:[%s2702_s7] sm:$0xff] %vm446_vm2, %v989_v54  ;;  %1088 = vst.msk [vmem:[%s2706_s8] sm:$0xff] %vm446_vm2, %v989_v54  ;;  %v1005_v1 = vpop.permute.xlu0 %1004 }
 0x30d   : > { %1053 = vst.msk [vmem:[#allocation2] sm:$0xff] %vm1052_vm3, %v2593_v27  ;;  %1104 = vst.msk [vmem:[%s2706_s8] sm:$0xff] %vm1052_vm3, %v2593_v27 }
 0x30e   : > { %1037 = vst.msk [vmem:[#allocation2 + $0x8] sm:$0xff] %vm446_vm2, %v991_v61  ;;  %1070 = vst.msk [vmem:[%s2702_s7 + $0x8] sm:$0xff] %vm446_vm2, %v991_v61 }
 0x30f   : > { %1089 = vst.msk [vmem:[%s2706_s8 + $0x8] sm:$0xff] %vm446_vm2, %v991_v61  ;;  %1044 = vst.msk [vmem:[#allocation2 + $0x40] sm:$0xff] %vm446_vm2, %v1005_v1  ;;  %v1007_v8 = vpop.permute.xlu1 %1006 }
 0x310   : > { %1054 = vst.msk [vmem:[#allocation2 + $0x8] sm:$0xff] %vm1052_vm3, %v2601_v13  ;;  %1105 = vst.msk [vmem:[%s2706_s8 + $0x8] sm:$0xff] %vm1052_vm3, %v2601_v13  ;;  %v1001_v27 = vpop.permute.xlu0 %1000 }
 0x311   : > { %1077 = vst.msk [vmem:[%s2702_s7 + $0x40] sm:$0xff] %vm446_vm2, %v1005_v1  ;;  %1096 = vst.msk [vmem:[%s2706_s8 + $0x40] sm:$0xff] %vm446_vm2, %v1005_v1 }
 0x312   : > { %1061 = vst.msk [vmem:[#allocation2 + $0x40] sm:$0xff] %vm1052_vm3, %v2603_v14  ;;  %1112 = vst.msk [vmem:[%s2706_s8 + $0x40] sm:$0xff] %vm1052_vm3, %v2603_v14 }
 0x313   : > { %1045 = vst.msk [vmem:[#allocation2 + $0x48] sm:$0xff] %vm446_vm2, %v1007_v8  ;;  %1078 = vst.msk [vmem:[%s2702_s7 + $0x48] sm:$0xff] %vm446_vm2, %v1007_v8  ;;  %v1003_v13 = vpop.permute.xlu1 %1002 }
 0x314   : > { %1097 = vst.msk [vmem:[%s2706_s8 + $0x48] sm:$0xff] %vm446_vm2, %v1007_v8  ;;  %1042 = vst.msk [vmem:[#allocation2 + $0x30] sm:$0xff] %vm446_vm2, %v1001_v27  ;;  %v997_v14 = vpop.permute.xlu0 %996 }
 0x315   : > { %1062 = vst.msk [vmem:[#allocation2 + $0x48] sm:$0xff] %vm1052_vm3, %v2612_v26  ;;  %1113 = vst.msk [vmem:[%s2706_s8 + $0x48] sm:$0xff] %vm1052_vm3, %v2612_v26 }
 0x316   : > { %1075 = vst.msk [vmem:[%s2702_s7 + $0x30] sm:$0xff] %vm446_vm2, %v1001_v27  ;;  %1094 = vst.msk [vmem:[%s2706_s8 + $0x30] sm:$0xff] %vm446_vm2, %v1001_v27 }
 0x317   : > { %1059 = vst.msk [vmem:[#allocation2 + $0x30] sm:$0xff] %vm1052_vm3, %v2614_v30  ;;  %1110 = vst.msk [vmem:[%s2706_s8 + $0x30] sm:$0xff] %vm1052_vm3, %v2614_v30  ;;  %v999_v26 = vpop.permute.xlu1 %998 }
 0x318   : > { %1043 = vst.msk [vmem:[#allocation2 + $0x38] sm:$0xff] %vm446_vm2, %v1003_v13  ;;  %1076 = vst.msk [vmem:[%s2702_s7 + $0x38] sm:$0xff] %vm446_vm2, %v1003_v13  ;;  %v1013_v30 = vpop.permute.xlu0 %1012 }
 0x319   : > { %1095 = vst.msk [vmem:[%s2706_s8 + $0x38] sm:$0xff] %vm446_vm2, %v1003_v13  ;;  %1040 = vst.msk [vmem:[#allocation2 + $0x20] sm:$0xff] %vm446_vm2, %v997_v14 }
 0x31a   : > { %1060 = vst.msk [vmem:[#allocation2 + $0x38] sm:$0xff] %vm1052_vm3, %v2624_v45  ;;  %1111 = vst.msk [vmem:[%s2706_s8 + $0x38] sm:$0xff] %vm1052_vm3, %v2624_v45 }
 0x31b   : > { %1073 = vst.msk [vmem:[%s2702_s7 + $0x20] sm:$0xff] %vm446_vm2, %v997_v14  ;;  %1092 = vst.msk [vmem:[%s2706_s8 + $0x20] sm:$0xff] %vm446_vm2, %v997_v14  ;;  %v1015_v45 = vpop.permute.xlu1 %1014 }
 0x31c   : > { %1057 = vst.msk [vmem:[#allocation2 + $0x20] sm:$0xff] %vm1052_vm3, %v2626_v46  ;;  %1108 = vst.msk [vmem:[%s2706_s8 + $0x20] sm:$0xff] %vm1052_vm3, %v2626_v46  ;;  %v1017_v46 = vpop.permute.xlu0 %1016 }
 0x31d   : > { %1041 = vst.msk [vmem:[#allocation2 + $0x28] sm:$0xff] %vm446_vm2, %v999_v26  ;;  %1074 = vst.msk [vmem:[%s2702_s7 + $0x28] sm:$0xff] %vm446_vm2, %v999_v26 }
 0x31e   : > { %1093 = vst.msk [vmem:[%s2706_s8 + $0x28] sm:$0xff] %vm446_vm2, %v999_v26  ;;  %1048 = vst.msk [vmem:[#allocation2 + $0x60] sm:$0xff] %vm446_vm2, %v1013_v30 }
 0x31f   : > { %1058 = vst.msk [vmem:[#allocation2 + $0x28] sm:$0xff] %vm1052_vm3, %v2636_v52  ;;  %1109 = vst.msk [vmem:[%s2706_s8 + $0x28] sm:$0xff] %vm1052_vm3, %v2636_v52  ;;  %v1019_v52 = vpop.permute.xlu1 %1018 }
 0x320   : > { %1081 = vst.msk [vmem:[%s2702_s7 + $0x60] sm:$0xff] %vm446_vm2, %v1013_v30  ;;  %1100 = vst.msk [vmem:[%s2706_s8 + $0x60] sm:$0xff] %vm446_vm2, %v1013_v30 }
 0x321   : > { %1065 = vst.msk [vmem:[#allocation2 + $0x60] sm:$0xff] %vm1052_vm3, %v2638_v53  ;;  %1116 = vst.msk [vmem:[%s2706_s8 + $0x60] sm:$0xff] %vm1052_vm3, %v2638_v53 }
 0x322   : > { %1049 = vst.msk [vmem:[#allocation2 + $0x68] sm:$0xff] %vm446_vm2, %v1015_v45  ;;  %1082 = vst.msk [vmem:[%s2702_s7 + $0x68] sm:$0xff] %vm446_vm2, %v1015_v45 }
 0x323   : > { %1101 = vst.msk [vmem:[%s2706_s8 + $0x68] sm:$0xff] %vm446_vm2, %v1015_v45  ;;  %1050 = vst.msk [vmem:[#allocation2 + $0x70] sm:$0xff] %vm446_vm2, %v1017_v46  ;;  %1130 = sbr.rel (!%p2354_p3) target bundleno = 859 (0x35b), region = 48 }
 0x324   : > { %1066 = vst.msk [vmem:[#allocation2 + $0x68] sm:$0xff] %vm1052_vm3, %v2648_v23  ;;  %1117 = vst.msk [vmem:[%s2706_s8 + $0x68] sm:$0xff] %vm1052_vm3, %v2648_v23 }
 0x325   : > { %1083 = vst.msk [vmem:[%s2702_s7 + $0x70] sm:$0xff] %vm446_vm2, %v1017_v46  ;;  %1102 = vst.msk [vmem:[%s2706_s8 + $0x70] sm:$0xff] %vm446_vm2, %v1017_v46 }
 0x326   : > { %1067 = vst.msk [vmem:[#allocation2 + $0x70] sm:$0xff] %vm1052_vm3, %v2650_v3  ;;  %1118 = vst.msk [vmem:[%s2706_s8 + $0x70] sm:$0xff] %vm1052_vm3, %v2650_v3 }
 0x327   : > { %1051 = vst.msk [vmem:[#allocation2 + $0x78] sm:$0xff] %vm446_vm2, %v1019_v52  ;;  %1084 = vst.msk [vmem:[%s2702_s7 + $0x78] sm:$0xff] %vm446_vm2, %v1019_v52 }
 0x328   : > { %1103 = vst.msk [vmem:[%s2706_s8 + $0x78] sm:$0xff] %vm446_vm2, %v1019_v52 }
 0x329   : > { %1068 = vst.msk [vmem:[#allocation2 + $0x78] sm:$0xff] %vm1052_vm3, %v2658_v9  ;;  %1119 = vst.msk [vmem:[%s2706_s8 + $0x78] sm:$0xff] %vm1052_vm3, %v2658_v9 }
 0x32a   : > { %s3080_s18 = smov (!%p1133_p9, %s1132_s18), 16 }
 0x32b   : > { %s1717_s13 = sshll.u32 %s3080_s18, 7 }
 0x32c   : > { %p1720_p10 = scmp.eq.s32.totalorder %s1717_s13, 0 }
 0x32d   : > { %s2878_s14 = sshrl.u32 (!%p1720_p10), %s3080_s18, 4 }
 0x32e   : > { %1143 = sbr.rel (%p1720_p10) target bundleno = 859 (0x35b), region = 52  ;;  %p1721_p11 = scmp.le.s32.totalorder (!%p1720_p10), %s2878_s14, 0 }
 0x335   : > { %1583 = sbr.rel (%p1721_p11) target bundleno = 838 (0x346), region = 203  ;;  %s3067_s15 = smov (!%p1721_p11), %s2872_s12 }
 0x336   : > { %s3068_s16 = smov (!%p1721_p11), %s2702_s7  ;;  %s2887_s17 = smov (!%p1721_p11), 0  }
 0x337   : > { %s2889_s23 = smov (!%p1721_p11), 0  }
 0x33c LB: >> { %v1235_v53 = vld [vmem:[%s2231_s16] sm:$0xff]  ;;  %v1237_v59 = vld [vmem:[%s2231_s16 + $0x8] sm:$0xff]  ;;  %v1239_v60 = vld [vmem:[%s2231_s16 + $0x10] sm:$0xff]  ;;  %s1267_s25 = sadd.s32 1, %s2235_s17  ;;  %s1229_s23 = sadd.s32 1, %s2239_s23   ;;  %s2239_s23 = sphi %s2889_s23, %s1229_s23   ;;  %s2235_s17 = sphi %s2887_s17, %s3069_s17   ;;  %s2231_s16 = sphi %s3068_s16, %s1272_s16   ;;  %s2227_s15 = sphi %s3067_s15, %s1273_s15  }
 0x33d   : >> { %1236 = vst [vmem:[%s2227_s15] sm:$0xff] %v1235_v53  ;;  %1238 = vst [vmem:[%s2227_s15 + $0x8] sm:$0xff] %v1237_v59  ;;  %v1241_v23 = vld [vmem:[%s2231_s16 + $0x18] sm:$0xff]  ;;  %v1243_v3 = vld [vmem:[%s2231_s16 + $0x20] sm:$0xff]  ;;  %p1268_p12 = scmp.ge.s32.totalorder %s1267_s25, %s2878_s14  ;;  %p1228_p13 = scmp.ge.s32.totalorder %s1229_s23, %s2878_s14 }
 0x33e   : >> { %1240 = vst [vmem:[%s2227_s15 + $0x10] sm:$0xff] %v1239_v60  ;;  %v1245_v24 = vld [vmem:[%s2231_s16 + $0x28] sm:$0xff]  ;;  %1242 = vst [vmem:[%s2227_s15 + $0x18] sm:$0xff] %v1241_v23  ;;  %v1247_v34 = vld [vmem:[%s2231_s16 + $0x30] sm:$0xff] }
 0x33f   : >> { %1244 = vst [vmem:[%s2227_s15 + $0x20] sm:$0xff] %v1243_v3  ;;  %1246 = vst [vmem:[%s2227_s15 + $0x28] sm:$0xff] %v1245_v24  ;;  %v1249_v38 = vld [vmem:[%s2231_s16 + $0x38] sm:$0xff]  ;;  %v1251_v7 = vld [vmem:[%s2231_s16 + $0x40] sm:$0xff]  ;;  %s3082_s25 = smov (%p1268_p12, %s1267_s25), 0  ;;  %1231 = sbr.rel (!%p1228_p13) target bundleno = 828 (0x33c), region = 209 }
 0x340   : >> { %1248 = vst [vmem:[%s2227_s15 + $0x30] sm:$0xff] %v1247_v34  ;;  %1250 = vst [vmem:[%s2227_s15 + $0x38] sm:$0xff] %v1249_v38  ;;  %v1253_v9 = vld [vmem:[%s2231_s16 + $0x48] sm:$0xff]  ;;  %v1255_v10 = vld [vmem:[%s2231_s16 + $0x50] sm:$0xff]  ;;  %s1722_s27 = sshll.u32 %s3082_s25, 7  ;;  %s3069_s17 = smov %s3082_s25 }
 0x341   : >> { %1252 = vst [vmem:[%s2227_s15 + $0x40] sm:$0xff] %v1251_v7  ;;  %v1257_v28 = vld [vmem:[%s2231_s16 + $0x58] sm:$0xff]  ;;  %1254 = vst [vmem:[%s2227_s15 + $0x48] sm:$0xff] %v1253_v9  ;;  %v1259_v18 = vld [vmem:[%s2231_s16 + $0x60] sm:$0xff] }
 0x342   : >> { %1256 = vst [vmem:[%s2227_s15 + $0x50] sm:$0xff] %v1255_v10  ;;  %1258 = vst [vmem:[%s2227_s15 + $0x58] sm:$0xff] %v1257_v28  ;;  %v1261_v39 = vld [vmem:[%s2231_s16 + $0x68] sm:$0xff]  ;;  %v1263_v12 = vld [vmem:[%s2231_s16 + $0x70] sm:$0xff] }
 0x343   : >> { %1260 = vst [vmem:[%s2227_s15 + $0x60] sm:$0xff] %v1259_v18  ;;  %1262 = vst [vmem:[%s2227_s15 + $0x68] sm:$0xff] %v1261_v39  ;;  %v1265_v11 = vld [vmem:[%s2231_s16 + $0x78] sm:$0xff]  ;;  %s1272_s16 = scalar_lea.vmem %s2702_s7, %s1722_s27 [#allocation3]  }
 0x344   : >> { %1264 = vst [vmem:[%s2227_s15 + $0x70] sm:$0xff] %v1263_v12  ;;  %1266 = vst [vmem:[%s2227_s15 + $0x78] sm:$0xff] %v1265_v11  ;;  %s1273_s15 = scalar_lea.vmem %s2872_s12, %s1722_s27  }
 0x346 PF: > { %s2947_s29 = sand.u32 15, %s3080_s18   ;;  %s1747_s30 = sshll.u32 %s2878_s14, 7 }
 0x347   : > { %s1278_s9 = scalar_lea.vmem %s2702_s7, %s1747_s30 [#allocation3]   ;;  %s1280_s10 = scalar_lea.vmem %s2872_s12, %s1747_s30  }
 0x348   : > { %p1727_p0 = scmp.le.s32.totalorder %s2947_s29, 0 }
 0x349   : > { %s2241_s11 = smov (!%p1727_p0), %s1280_s10   ;;  %s2245_s13 = smov (!%p1727_p0), %s1278_s9  }
 0x34a   : > { %1597 = sbr.rel (%p1727_p0) target bundleno = 859 (0x35b), region = 214  ;;  %s2249_s27 = smov (!%p1727_p0), 0  }
 0x34b   : > { %s2253_s25 = smov (!%p1727_p0), 0  }
 0x351 LB: >> { %v1290_v19 = vld [vmem:[%s2247_s13] sm:$0xff]  ;;  %s1292_s18 = sadd.s32 1, %s2251_s27  ;;  %s1284_s25 = sadd.s32 1, %s2255_s25   ;;  %s2255_s25 = sphi %s2253_s25, %s1284_s25   ;;  %s2251_s27 = sphi %s2249_s27, %s2250_s27   ;;  %s2247_s13 = sphi %s2245_s13, %s1297_s13   ;;  %s2243_s11 = sphi %s2241_s11, %s1298_s11  }
 0x352   : >> { %1291 = vst [vmem:[%s2243_s11] sm:$0xff] %v1290_v19  ;;  %p1293_p1 = scmp.ge.s32.totalorder %s1292_s18, %s2947_s29  ;;  %p1283_p2 = scmp.ge.s32.totalorder %s1284_s25, %s2947_s29 }
 0x354   : >> { %s3084_s18 = smov (%p1293_p1, %s1292_s18), 0  ;;  %1286 = sbr.rel (!%p1283_p2) target bundleno = 849 (0x351), region = 220 }
 0x355   : >> { %s1728_s7 = sshll.u32 %s3084_s18, 3  ;;  %s2250_s27 = smov %s3084_s18  }
 0x356   : >> { %s1297_s13 = scalar_lea.vmem %s1278_s9, %s1728_s7 [#allocation3]   ;;  %s1298_s11 = scalar_lea.vmem %s1280_s10, %s1728_s7  }
 0x35b PF: > { %1304 = sbr.rel (!%p2354_p3) target bundleno = 915 (0x393), region = 100  ;;  %s1306_s12 = ssub.s32 (%p2354_p3), 61, %s2369_s6 }
 0x35c   : > { %s1749_s14 = sshll.u32 (%p2354_p3), %s2215_s20, 7  ;;  %p1307_p4 = scmp.lt.s32.totalorder (%p2354_p3), %s1306_s12, 16 }
 0x35d   : > { %s2962_s17 = scalar_lea.vmem (%p2354_p3), %s3065_s5, %s1749_s14  }
 0x362   : > { %s3086_s12 = smov (!%p1307_p4, %s1306_s12), 16 }
 0x363   : > { %s1731_s23 = sshll.u32 %s3086_s12, 7 }
 0x364   : > { %p1734_p5 = scmp.eq.s32.totalorder %s1731_s23, 0 }
 0x365   : > { %s2968_s29 = sshrl.u32 (!%p1734_p5), %s3086_s12, 4 }
 0x366   : > { %1315 = sbr.rel (%p1734_p5) target bundleno = 915 (0x393), region = 104  ;;  %p1735_p3 = scmp.le.s32.totalorder (!%p1734_p5), %s2968_s29, 0 }
 0x36d   : > { %1611 = sbr.rel (%p1735_p3) target bundleno = 894 (0x37e), region = 225  ;;  %s3070_s20 = smov (!%p1735_p3), %s2962_s17 }
 0x36e   : > { %s3071_s26 = smov (!%p1735_p3), %s2706_s8  ;;  %s2977_s6 = smov (!%p1735_p3), 0  }
 0x36f   : > { %s2979_s30 = smov (!%p1735_p3), 0  }
 0x374 LB: >> { %v1407_v20 = vld [vmem:[%s2263_s26] sm:$0xff]  ;;  %v1409_v17 = vld [vmem:[%s2263_s26 + $0x8] sm:$0xff]  ;;  %v1411_v21 = vld [vmem:[%s2263_s26 + $0x10] sm:$0xff]  ;;  %s1439_s9 = sadd.s32 1, %s2267_s6  ;;  %s1401_s30 = sadd.s32 1, %s2271_s30   ;;  %s2271_s30 = sphi %s2979_s30, %s1401_s30   ;;  %s2267_s6 = sphi %s2977_s6, %s3072_s6   ;;  %s2263_s26 = sphi %s3071_s26, %s1444_s26   ;;  %s2259_s20 = sphi %s3070_s20, %s1445_s20  }
 0x375   : >> { %1408 = vst [vmem:[%s2259_s20] sm:$0xff] %v1407_v20  ;;  %1410 = vst [vmem:[%s2259_s20 + $0x8] sm:$0xff] %v1409_v17  ;;  %v1413_v37 = vld [vmem:[%s2263_s26 + $0x18] sm:$0xff]  ;;  %v1415_v22 = vld [vmem:[%s2263_s26 + $0x20] sm:$0xff]  ;;  %p1440_p6 = scmp.ge.s32.totalorder %s1439_s9, %s2968_s29  ;;  %p1400_p7 = scmp.ge.s32.totalorder %s1401_s30, %s2968_s29 }
 0x376   : >> { %1412 = vst [vmem:[%s2259_s20 + $0x10] sm:$0xff] %v1411_v21  ;;  %v1417_v35 = vld [vmem:[%s2263_s26 + $0x28] sm:$0xff]  ;;  %1414 = vst [vmem:[%s2259_s20 + $0x18] sm:$0xff] %v1413_v37  ;;  %v1419_v41 = vld [vmem:[%s2263_s26 + $0x30] sm:$0xff] }
 0x377   : >> { %1416 = vst [vmem:[%s2259_s20 + $0x20] sm:$0xff] %v1415_v22  ;;  %1418 = vst [vmem:[%s2259_s20 + $0x28] sm:$0xff] %v1417_v35  ;;  %v1421_v42 = vld [vmem:[%s2263_s26 + $0x38] sm:$0xff]  ;;  %v1423_v43 = vld [vmem:[%s2263_s26 + $0x40] sm:$0xff]  ;;  %s3088_s9 = smov (%p1440_p6, %s1439_s9), 0  ;;  %1403 = sbr.rel (!%p1400_p7) target bundleno = 884 (0x374), region = 231 }
 0x378   : >> { %1420 = vst [vmem:[%s2259_s20 + $0x30] sm:$0xff] %v1419_v41  ;;  %1422 = vst [vmem:[%s2259_s20 + $0x38] sm:$0xff] %v1421_v42  ;;  %v1425_v58 = vld [vmem:[%s2263_s26 + $0x48] sm:$0xff]  ;;  %v1427_v0 = vld [vmem:[%s2263_s26 + $0x50] sm:$0xff]  ;;  %s1736_s10 = sshll.u32 %s3088_s9, 7  ;;  %s3072_s6 = smov %s3088_s9 }
 0x379   : >> { %1424 = vst [vmem:[%s2259_s20 + $0x40] sm:$0xff] %v1423_v43  ;;  %v1429_v48 = vld [vmem:[%s2263_s26 + $0x58] sm:$0xff]  ;;  %1426 = vst [vmem:[%s2259_s20 + $0x48] sm:$0xff] %v1425_v58  ;;  %v1431_v57 = vld [vmem:[%s2263_s26 + $0x60] sm:$0xff] }
 0x37a   : >> { %1428 = vst [vmem:[%s2259_s20 + $0x50] sm:$0xff] %v1427_v0  ;;  %1430 = vst [vmem:[%s2259_s20 + $0x58] sm:$0xff] %v1429_v48  ;;  %v1433_v36 = vld [vmem:[%s2263_s26 + $0x68] sm:$0xff]  ;;  %v1435_v2 = vld [vmem:[%s2263_s26 + $0x70] sm:$0xff] }
 0x37b   : >> { %1432 = vst [vmem:[%s2259_s20 + $0x60] sm:$0xff] %v1431_v57  ;;  %1434 = vst [vmem:[%s2259_s20 + $0x68] sm:$0xff] %v1433_v36  ;;  %v1437_v29 = vld [vmem:[%s2263_s26 + $0x78] sm:$0xff]  ;;  %s1444_s26 = scalar_lea.vmem %s2706_s8, %s1736_s10 [#allocation4]  }
 0x37c   : >> { %1436 = vst [vmem:[%s2259_s20 + $0x70] sm:$0xff] %v1435_v2  ;;  %1438 = vst [vmem:[%s2259_s20 + $0x78] sm:$0xff] %v1437_v29  ;;  %s1445_s20 = scalar_lea.vmem %s2962_s17, %s1736_s10  }
 0x37e PF: > { %s3037_s11 = sand.u32 15, %s3086_s12   ;;  %s1750_s13 = sshll.u32 %s2968_s29, 7 }
 0x37f   : > { %s1450_s27 = scalar_lea.vmem %s2706_s8, %s1750_s13 [#allocation4]   ;;  %s1452_s25 = scalar_lea.vmem %s2962_s17, %s1750_s13  }
 0x380   : > { %p1741_p8 = scmp.le.s32.totalorder %s3037_s11, 0 }
 0x381   : > { %s2273_s18 = smov (!%p1741_p8), %s1452_s25   ;;  %s2277_s7 = smov (!%p1741_p8), %s1450_s27  }
 0x382   : > { %1625 = sbr.rel (%p1741_p8) target bundleno = 915 (0x393), region = 236  ;;  %s2281_s14 = smov (!%p1741_p8), 0  }
 0x383   : > { %s2285_s15 = smov (!%p1741_p8), 0  }
 0x389 LB: >> { %v1462_v62 = vld [vmem:[%s2279_s7] sm:$0xff]  ;;  %s1464_s12 = sadd.s32 1, %s2283_s14  ;;  %s1456_s15 = sadd.s32 1, %s2287_s15   ;;  %s2287_s15 = sphi %s2285_s15, %s1456_s15   ;;  %s2283_s14 = sphi %s2281_s14, %s2282_s14   ;;  %s2279_s7 = sphi %s2277_s7, %s1469_s7   ;;  %s2275_s18 = sphi %s2273_s18, %s1470_s18  }
 0x38a   : >> { %1463 = vst [vmem:[%s2275_s18] sm:$0xff] %v1462_v62  ;;  %p1465_p9 = scmp.ge.s32.totalorder %s1464_s12, %s3037_s11  ;;  %p1455_p10 = scmp.ge.s32.totalorder %s1456_s15, %s3037_s11 }
 0x38c   : >> { %s3090_s12 = smov (%p1465_p9, %s1464_s12), 0  ;;  %1458 = sbr.rel (!%p1455_p10) target bundleno = 905 (0x389), region = 242 }
 0x38d   : >> { %s1742_s8 = sshll.u32 %s3090_s12, 3  ;;  %s2282_s14 = smov %s3090_s12  }
 0x38e   : >> { %s1469_s7 = scalar_lea.vmem %s1450_s27, %s1742_s8 [#allocation4]   ;;  %s1470_s18 = scalar_lea.vmem %s1452_s25, %s1742_s8  }
 0x393 PF: > { %s16_s22 = sadd.s32 1, %s2223_s22   ;;  %s3073_s18 = smov %s2211_s19 }
 0x394   : > { %p13_p11 = scmp.ge.s32.totalorder %s16_s22, 6   ;;  %s3074_s19 = smov %s2363_s28 }
 0x395   : > { %s3075_s20 = smov %s2219_s21  ;;  %s3076_s21 = smov %s3078_s24 }
 0x396   :  { %15 = sbr.rel (!%p13_p11) target bundleno = 3 (0x3), region = 253 }

</bundles_post_ra>
